<compile_context>
chip_gen: v6e
topology: v6e:2x2x1
jax: 0.10.0
libtpu: 0.0.40
codegen_flags: <defaults>
</compile_context>

<pallas_src>
import jax
import jax.numpy as jnp
from jax import lax
from jax.experimental import pallas as pl
from jax.experimental.pallas import tpu as pltpu


def deconv_connect_block(x1_nchw, x2_nchw, w1, b1, w2, b2):
    N, C2, H, W = x1_nchw.shape
    C = C2 // 2
    Hp, Wp = 2 * H, 2 * W
    Wp2 = Wp + 2
    HW = H * W
    LWIN = Hp * Wp2                    # per-tap window length (junk-column trick)
    LTOT = (Hp + 3) * Wp2              # padded-flat scratch length incl. slack

    # ---- free input layout passes (channel-major, spatial flattened) ----
    x1_cm = x1_nchw.reshape(N, C2, HW)
    x2_cm = x2_nchw.reshape(N, C, Hp * Wp)

    # ---- tiny weight re-layouts ----
    # ConvTranspose2d weight (2C_in, C_out, 2, 2) -> (kh, kw, co, ci)
    w1_t = jnp.transpose(w1, (2, 3, 1, 0)).astype(jnp.float32)            # (2, 2, C, 2C)
    # Conv2d weight (C_out, 2C_in, 3, 3) -> (tap, co, ci)
    w2_t = jnp.transpose(w2, (2, 3, 0, 1)).reshape(9, C, C2).astype(jnp.float32)
    b1_c = b1[:, None].astype(jnp.float32)                                # (C, 1)
    b2_c = b2[:, None].astype(jnp.float32)                                # (C, 1)

    # Interleave matrices: P[kw][k, l] = 1 iff l == 2k + kw  (k < H*W, l < H*Wp).
    # Right-multiplying a per-(kh,kw) deconv result by P[kw] spreads it onto the
    # even/odd output columns on the MXU (no minor-dim reshape / strided store needed).
    k_idx = jnp.arange(HW)[:, None]
    l_idx = jnp.arange(2 * HW)[None, :]
    P = jnp.stack([(l_idx == 2 * k_idx).astype(jnp.float32),
                   (l_idx == 2 * k_idx + 1).astype(jnp.float32)], axis=0)  # (2, HW, 2HW)

    def kernel(x1_ref, x2_ref, w1t_ref, b1_ref, w2t_ref, b2_ref, p_ref,
               o_ref, pad_ref):
        # Zero the padded scratch every step: borders/slack must be 0, interior is fully
        # rewritten below.  In this layout (8 sublanes x ~3 vreg columns) this is a
        # handful of stores, and it keeps the batch grid axis dependency-free.
        pad_ref[...] = jnp.zeros_like(pad_ref)

        x1 = x1_ref[0, :, :]                                 # (2C, H*W)
        b1v = b1_ref[...]                                    # (C, 1)

        # ---- ConvTranspose2d(k=2,s=2): 2 dots per kh + MXU column-interleave, rows
        #      written straight into the y-half (channels [0,C)) of the padded scratch.
        for kh in range(2):
            r0 = jnp.dot(w1t_ref[kh, 0, :, :], x1, preferred_element_type=jnp.float32)
            r1 = jnp.dot(w1t_ref[kh, 1, :, :], x1, preferred_element_type=jnp.float32)
            inter = (jnp.dot(r0, p_ref[0, :, :], preferred_element_type=jnp.float32)
                     + jnp.dot(r1, p_ref[1, :, :], preferred_element_type=jnp.float32)
                     + b1v)                                  # (C, H*Wp): [h][2w+kw]
            for h in range(H):
                base = (1 + 2 * h + kh) * Wp2 + 1
                pad_ref[0:C, base:base + Wp] = inter[:, h * Wp:(h + 1) * Wp]

        # ---- x2 into the lower channel half (channels [C,2C)): channel-concat in VMEM.
        x2 = x2_ref[0, :, :]                                 # (C, Hp*Wp)
        for i in range(Hp):
            base = (1 + i) * Wp2 + 1
            pad_ref[C:C2, base:base + Wp] = x2[:, i * Wp:(i + 1) * Wp]

        # ---- 3x3 conv, pad=1: 9 taps, each one dot with K = 2C over a contiguous
        #      lane-offset window of the padded-flat scratch.
        acc = jnp.zeros((C, LWIN), jnp.float32)
        for kh in range(3):
            for kw in range(3):
                t = kh * 3 + kw
                off = kh * Wp2 + kw
                win = pad_ref[:, off:off + LWIN]             # (2C, Hp*(Wp+2))
                acc = acc + jnp.dot(w2t_ref[t, :, :], win,
                                    preferred_element_type=jnp.float32)

        # ---- crop the 2 junk columns per row once, add bias, lane-dense store.
        rows = [acc[:, i * Wp2:i * Wp2 + Wp] for i in range(Hp)]
        out = jnp.concatenate(rows, axis=1) + b2_ref[...]    # (C, Hp*Wp)
        o_ref[0, :, :] = out.astype(o_ref.dtype)

    out_flat = pl.pallas_call(
        kernel,
        out_shape=jax.ShapeDtypeStruct((N, C, Hp * Wp), jnp.float32),
        grid=(N,),
        in_specs=[
            pl.BlockSpec((1, C2, HW), lambda n: (n, 0, 0)),
            pl.BlockSpec((1, C, Hp * Wp), lambda n: (n, 0, 0)),
            pl.BlockSpec((2, 2, C, C2), lambda n: (0, 0, 0, 0)),
            pl.BlockSpec((C, 1), lambda n: (0, 0)),
            pl.BlockSpec((9, C, C2), lambda n: (0, 0, 0)),
            pl.BlockSpec((C, 1), lambda n: (0, 0)),
            pl.BlockSpec((2, HW, 2 * HW), lambda n: (0, 0, 0)),
        ],
        out_specs=pl.BlockSpec((1, C, Hp * Wp), lambda n: (n, 0, 0)),
        scratch_shapes=[pltpu.VMEM((C2, LTOT), jnp.float32)],
        compiler_params=pltpu.CompilerParams(
            dimension_semantics=("parallel",),
            vmem_limit_bytes=32 * 1024 * 1024),
    )(x1_cm, x2_cm, w1_t, b1_c, w2_t, b2_c, P)

    # Free reshape to NCHW -- no transpose pass needed.
    return out_flat.reshape(N, C, Hp, Wp)


# ----------------------------------------------------------------------------
# Pure-JAX reference (lax convolutions) for a correctness check.
# ----------------------------------------------------------------------------
def ref_forward(x1, x2, w1, b1, w2, b2):
    # ConvTranspose2d(k=2,s=2,p=0) == dilated conv with flipped, IO-swapped weights
    w1_conv = jnp.flip(jnp.transpose(w1, (1, 0, 2, 3)), axis=(2, 3))     # (C, 2C, 2, 2)
    y = lax.conv_general_dilated(
        x1, w1_conv, window_strides=(1, 1), padding=((1, 1), (1, 1)),
        lhs_dilation=(2, 2), dimension_numbers=('NCHW', 'OIHW', 'NCHW'))
    y = y + b1[None, :, None, None]
    yc = jnp.concatenate([y, x2], axis=1)
    out = lax.conv_general_dilated(
        yc, w2, window_strides=(1, 1), padding=((1, 1), (1, 1)),
        dimension_numbers=('NCHW', 'OIHW', 'NCHW'))
    return out + b2[None, :, None, None]


if __name__ == "__main__":
    channels = 4
    N, H, W = 2, 8, 8                     # x1 spatial; x2 is (2H, 2W)

    key = jax.random.PRNGKey(0)
    k1, k2, k3, k4, k5, k6 = jax.random.split(key, 6)

    x1 = jax.random.normal(k1, (N, channels * 2, H, W), jnp.float32)
    x2 = jax.random.normal(k2, (N, channels, 2 * H, 2 * W), jnp.float32)

    # Parameter shapes per nn.ConvTranspose2d / nn.Conv2d.
    w1 = 0.1 * jax.random.normal(k3, (channels * 2, channels, 2, 2), jnp.float32)
    b1 = 0.1 * jax.random.normal(k4, (channels,), jnp.float32)
    w2 = 0.1 * jax.random.normal(k5, (channels, channels * 2, 3, 3), jnp.float32)
    b2 = 0.1 * jax.random.normal(k6, (channels,), jnp.float32)

    out = deconv_connect_block(x1, x2, w1, b1, w2, b2)
    out = jax.block_until_ready(out)

    ref = jax.block_until_ready(ref_forward(x1, x2, w1, b1, w2, b2))
    assert out.shape == (N, channels, 2 * H, 2 * W), out.shape
    assert jnp.allclose(out, ref, atol=1e-4, rtol=1e-4), float(jnp.abs(out - ref).max())

    print("KERNEL_OK")
</pallas_src>

<mosaic_0001>
module attributes {stable_mosaic.version = 11 : i64} {
  func.func @kernel(%arg0: i32, %arg1: memref<1x8x64xf32, #tpu.memory_space<vmem>>, %arg2: memref<1x4x256xf32, #tpu.memory_space<vmem>>, %arg3: memref<2x2x4x8xf32, #tpu.memory_space<vmem>>, %arg4: memref<4x1xf32, #tpu.memory_space<vmem>>, %arg5: memref<9x4x8xf32, #tpu.memory_space<vmem>>, %arg6: memref<4x1xf32, #tpu.memory_space<vmem>>, %arg7: memref<2x64x128xf32, #tpu.memory_space<vmem>>, %arg8: memref<1x4x256xf32, #tpu.memory_space<vmem>>, %arg9: memref<8x342xf32, #tpu.memory_space<vmem>>) attributes {dimension_semantics = [#tpu.dimension_semantics<parallel>], iteration_bounds = array<i64: 2>, scalar_prefetch = 0 : i64, scratch_operands = 1 : i64, tpu.core_type = #tpu.core_type<tc>, window_params = [{transform_indices = @transform_0, window_bounds = array<i64: 1, 8, 64>}, {transform_indices = @transform_1, window_bounds = array<i64: 1, 4, 256>}, {pipeline_mode = #tpu.pipeline_mode<synchronous>, transform_indices = @transform_2, window_bounds = array<i64: 2, 2, 4, 8>}, {pipeline_mode = #tpu.pipeline_mode<synchronous>, transform_indices = @transform_3, window_bounds = array<i64: 4, 1>}, {pipeline_mode = #tpu.pipeline_mode<synchronous>, transform_indices = @transform_4, window_bounds = array<i64: 9, 4, 8>}, {pipeline_mode = #tpu.pipeline_mode<synchronous>, transform_indices = @transform_5, window_bounds = array<i64: 4, 1>}, {pipeline_mode = #tpu.pipeline_mode<synchronous>, transform_indices = @transform_6, window_bounds = array<i64: 2, 64, 128>}, {transform_indices = @transform_7, window_bounds = array<i64: 1, 4, 256>}]} {
    %cst = arith.constant 0.000000e+00 : f32
    %0 = vector.broadcast %cst : f32 to vector<8x342xf32>
    %c0 = arith.constant 0 : index
    %c0_0 = arith.constant 0 : index
    %1 = vector.load %arg9[%c0, %c0_0] : memref<8x342xf32, #tpu.memory_space<vmem>>, vector<8x342xf32>
    tpu.vector_store %arg9[%c0, %c0_0], %0 {strides = array<i32>} : memref<8x342xf32, #tpu.memory_space<vmem>>, vector<8x342xf32>,
    %c0_1 = arith.constant 0 : index
    %c0_2 = arith.constant 0 : index
    %c0_3 = arith.constant 0 : index
    %2 = vector.load %arg1[%c0_1, %c0_2, %c0_3] : memref<1x8x64xf32, #tpu.memory_space<vmem>>, vector<1x8x64xf32>
    %3 = vector.shape_cast %2 : vector<1x8x64xf32> to vector<8x64xf32>
    %c0_4 = arith.constant 0 : index
    %c0_5 = arith.constant 0 : index
    %4 = vector.load %arg4[%c0_4, %c0_5] : memref<4x1xf32, #tpu.memory_space<vmem>>, vector<4x1xf32>
    %c0_6 = arith.constant 0 : index
    %c0_7 = arith.constant 0 : index
    %c0_8 = arith.constant 0 : index
    %c0_9 = arith.constant 0 : index
    %5 = vector.load %arg3[%c0_6, %c0_7, %c0_8, %c0_9] : memref<2x2x4x8xf32, #tpu.memory_space<vmem>>, vector<1x1x4x8xf32>
    %6 = vector.shape_cast %5 : vector<1x1x4x8xf32> to vector<4x8xf32>
    %cst_10 = arith.constant dense<0.000000e+00> : vector<4x64xf32>
    %7 = tpu.matmul %6, %3, %cst_10 {dimension_numbers = #tpu.dot_dimension_numbers<[1], [0], [0], [1], [0, 0, 1, 1], [], []>} : vector<4x8xf32>, vector<8x64xf32>, vector<4x64xf32> -> vector<4x64xf32>
    %c0_11 = arith.constant 0 : index
    %c1 = arith.constant 1 : index
    %c0_12 = arith.constant 0 : index
    %c0_13 = arith.constant 0 : index
    %8 = vector.load %arg3[%c0_11, %c1, %c0_12, %c0_13] : memref<2x2x4x8xf32, #tpu.memory_space<vmem>>, vector<1x1x4x8xf32>
    %9 = vector.shape_cast %8 : vector<1x1x4x8xf32> to vector<4x8xf32>
    %cst_14 = arith.constant dense<0.000000e+00> : vector<4x64xf32>
    %10 = tpu.matmul %9, %3, %cst_14 {dimension_numbers = #tpu.dot_dimension_numbers<[1], [0], [0], [1], [0, 0, 1, 1], [], []>} : vector<4x8xf32>, vector<8x64xf32>, vector<4x64xf32> -> vector<4x64xf32>
    %c0_15 = arith.constant 0 : index
    %c0_16 = arith.constant 0 : index
    %c0_17 = arith.constant 0 : index
    %11 = vector.load %arg7[%c0_15, %c0_16, %c0_17] : memref<2x64x128xf32, #tpu.memory_space<vmem>>, vector<1x64x128xf32>
    %12 = vector.shape_cast %11 : vector<1x64x128xf32> to vector<64x128xf32>
    %cst_18 = arith.constant dense<0.000000e+00> : vector<4x128xf32>
    %13 = tpu.matmul %7, %12, %cst_18 {dimension_numbers = #tpu.dot_dimension_numbers<[1], [0], [0], [1], [0, 0, 1, 1], [], []>} : vector<4x64xf32>, vector<64x128xf32>, vector<4x128xf32> -> vector<4x128xf32>
    %c1_19 = arith.constant 1 : index
    %c0_20 = arith.constant 0 : index
    %c0_21 = arith.constant 0 : index
    %14 = vector.load %arg7[%c1_19, %c0_20, %c0_21] : memref<2x64x128xf32, #tpu.memory_space<vmem>>, vector<1x64x128xf32>
    %15 = vector.shape_cast %14 : vector<1x64x128xf32> to vector<64x128xf32>
    %cst_22 = arith.constant dense<0.000000e+00> : vector<4x128xf32>
    %16 = tpu.matmul %10, %15, %cst_22 {dimension_numbers = #tpu.dot_dimension_numbers<[1], [0], [0], [1], [0, 0, 1, 1], [], []>} : vector<4x64xf32>, vector<64x128xf32>, vector<4x128xf32> -> vector<4x128xf32>
    %17 = arith.addf %13, %16 : vector<4x128xf32>
    %18 = vector.broadcast %4 : vector<4x1xf32> to vector<4x128xf32>
    %19 = arith.addf %17, %18 : vector<4x128xf32>
    %20 = vector.extract_strided_slice %19 {offsets = [0, 0], sizes = [4, 16], strides = [1, 1]} : vector<4x128xf32> to vector<4x16xf32>
    %c0_23 = arith.constant 0 : index
    %c19 = arith.constant 19 : index
    %21 = vector.load %arg9[%c0_23, %c19] : memref<8x342xf32, #tpu.memory_space<vmem>>, vector<4x16xf32>
    tpu.vector_store %arg9[%c0_23, %c19], %20 {strides = array<i32>} : memref<8x342xf32, #tpu.memory_space<vmem>>, vector<4x16xf32>,
    %22 = vector.extract_strided_slice %19 {offsets = [0, 16], sizes = [4, 16], strides = [1, 1]} : vector<4x128xf32> to vector<4x16xf32>
    %c0_24 = arith.constant 0 : index
    %c55 = arith.constant 55 : index
    %23 = vector.load %arg9[%c0_24, %c55] : memref<8x342xf32, #tpu.memory_space<vmem>>, vector<4x16xf32>
    tpu.vector_store %arg9[%c0_24, %c55], %22 {strides = array<i32>} : memref<8x342xf32, #tpu.memory_space<vmem>>, vector<4x16xf32>,
    %24 = vector.extract_strided_slice %19 {offsets = [0, 32], sizes = [4, 16], strides = [1, 1]} : vector<4x128xf32> to vector<4x16xf32>
    %c0_25 = arith.constant 0 : index
    %c91 = arith.constant 91 : index
    %25 = vector.load %arg9[%c0_25, %c91] : memref<8x342xf32, #tpu.memory_space<vmem>>, vector<4x16xf32>
    tpu.vector_store %arg9[%c0_25, %c91], %24 {strides = array<i32>} : memref<8x342xf32, #tpu.memory_space<vmem>>, vector<4x16xf32>,
    %26 = vector.extract_strided_slice %19 {offsets = [0, 48], sizes = [4, 16], strides = [1, 1]} : vector<4x128xf32> to vector<4x16xf32>
    %c0_26 = arith.constant 0 : index
    %c127 = arith.constant 127 : index
    %27 = vector.load %arg9[%c0_26, %c127] : memref<8x342xf32, #tpu.memory_space<vmem>>, vector<4x16xf32>
    tpu.vector_store %arg9[%c0_26, %c127], %26 {strides = array<i32>} : memref<8x342xf32, #tpu.memory_space<vmem>>, vector<4x16xf32>,
    %28 = vector.extract_strided_slice %19 {offsets = [0, 64], sizes = [4, 16], strides = [1, 1]} : vector<4x128xf32> to vector<4x16xf32>
    %c0_27 = arith.constant 0 : index
    %c163 = arith.constant 163 : index
    %29 = vector.load %arg9[%c0_27, %c163] : memref<8x342xf32, #tpu.memory_space<vmem>>, vector<4x16xf32>
    tpu.vector_store %arg9[%c0_27, %c163], %28 {strides = array<i32>} : memref<8x342xf32, #tpu.memory_space<vmem>>, vector<4x16xf32>,
    %30 = vector.extract_strided_slice %19 {offsets = [0, 80], sizes = [4, 16], strides = [1, 1]} : vector<4x128xf32> to vector<4x16xf32>
    %c0_28 = arith.constant 0 : index
    %c199 = arith.constant 199 : index
    %31 = vector.load %arg9[%c0_28, %c199] : memref<8x342xf32, #tpu.memory_space<vmem>>, vector<4x16xf32>
    tpu.vector_store %arg9[%c0_28, %c199], %30 {strides = array<i32>} : memref<8x342xf32, #tpu.memory_space<vmem>>, vector<4x16xf32>,
    %32 = vector.extract_strided_slice %19 {offsets = [0, 96], sizes = [4, 16], strides = [1, 1]} : vector<4x128xf32> to vector<4x16xf32>
    %c0_29 = arith.constant 0 : index
    %c235 = arith.constant 235 : index
    %33 = vector.load %arg9[%c0_29, %c235] : memref<8x342xf32, #tpu.memory_space<vmem>>, vector<4x16xf32>
    tpu.vector_store %arg9[%c0_29, %c235], %32 {strides = array<i32>} : memref<8x342xf32, #tpu.memory_space<vmem>>, vector<4x16xf32>,
    %34 = vector.extract_strided_slice %19 {offsets = [0, 112], sizes = [4, 16], strides = [1, 1]} : vector<4x128xf32> to vector<4x16xf32>
    %c0_30 = arith.constant 0 : index
    %c271 = arith.constant 271 : index
    %35 = vector.load %arg9[%c0_30, %c271] : memref<8x342xf32, #tpu.memory_space<vmem>>, vector<4x16xf32>
    tpu.vector_store %arg9[%c0_30, %c271], %34 {strides = array<i32>} : memref<8x342xf32, #tpu.memory_space<vmem>>, vector<4x16xf32>,
    %c1_31 = arith.constant 1 : index
    %c0_32 = arith.constant 0 : index
    %c0_33 = arith.constant 0 : index
    %c0_34 = arith.constant 0 : index
    %36 = vector.load %arg3[%c1_31, %c0_32, %c0_33, %c0_34] : memref<2x2x4x8xf32, #tpu.memory_space<vmem>>, vector<1x1x4x8xf32>
    %37 = vector.shape_cast %36 : vector<1x1x4x8xf32> to vector<4x8xf32>
    %cst_35 = arith.constant dense<0.000000e+00> : vector<4x64xf32>
    %38 = tpu.matmul %37, %3, %cst_35 {dimension_numbers = #tpu.dot_dimension_numbers<[1], [0], [0], [1], [0, 0, 1, 1], [], []>} : vector<4x8xf32>, vector<8x64xf32>, vector<4x64xf32> -> vector<4x64xf32>
    %c1_36 = arith.constant 1 : index
    %c1_37 = arith.constant 1 : index
    %c0_38 = arith.constant 0 : index
    %c0_39 = arith.constant 0 : index
    %39 = vector.load %arg3[%c1_36, %c1_37, %c0_38, %c0_39] : memref<2x2x4x8xf32, #tpu.memory_space<vmem>>, vector<1x1x4x8xf32>
    %40 = vector.shape_cast %39 : vector<1x1x4x8xf32> to vector<4x8xf32>
    %cst_40 = arith.constant dense<0.000000e+00> : vector<4x64xf32>
    %41 = tpu.matmul %40, %3, %cst_40 {dimension_numbers = #tpu.dot_dimension_numbers<[1], [0], [0], [1], [0, 0, 1, 1], [], []>} : vector<4x8xf32>, vector<8x64xf32>, vector<4x64xf32> -> vector<4x64xf32>
    %c0_41 = arith.constant 0 : index
    %c0_42 = arith.constant 0 : index
    %c0_43 = arith.constant 0 : index
    %42 = vector.load %arg7[%c0_41, %c0_42, %c0_43] : memref<2x64x128xf32, #tpu.memory_space<vmem>>, vector<1x64x128xf32>
    %43 = vector.shape_cast %42 : vector<1x64x128xf32> to vector<64x128xf32>
    %cst_44 = arith.constant dense<0.000000e+00> : vector<4x128xf32>
    %44 = tpu.matmul %38, %43, %cst_44 {dimension_numbers = #tpu.dot_dimension_numbers<[1], [0], [0], [1], [0, 0, 1, 1], [], []>} : vector<4x64xf32>, vector<64x128xf32>, vector<4x128xf32> -> vector<4x128xf32>
    %c1_45 = arith.constant 1 : index
    %c0_46 = arith.constant 0 : index
    %c0_47 = arith.constant 0 : index
    %45 = vector.load %arg7[%c1_45, %c0_46, %c0_47] : memref<2x64x128xf32, #tpu.memory_space<vmem>>, vector<1x64x128xf32>
    %46 = vector.shape_cast %45 : vector<1x64x128xf32> to vector<64x128xf32>
    %cst_48 = arith.constant dense<0.000000e+00> : vector<4x128xf32>
    %47 = tpu.matmul %41, %46, %cst_48 {dimension_numbers = #tpu.dot_dimension_numbers<[1], [0], [0], [1], [0, 0, 1, 1], [], []>} : vector<4x64xf32>, vector<64x128xf32>, vector<4x128xf32> -> vector<4x128xf32>
    %48 = arith.addf %44, %47 : vector<4x128xf32>
    %49 = vector.broadcast %4 : vector<4x1xf32> to vector<4x128xf32>
    %50 = arith.addf %48, %49 : vector<4x128xf32>
    %51 = vector.extract_strided_slice %50 {offsets = [0, 0], sizes = [4, 16], strides = [1, 1]} : vector<4x128xf32> to vector<4x16xf32>
    %c0_49 = arith.constant 0 : index
    %c37 = arith.constant 37 : index
    %52 = vector.load %arg9[%c0_49, %c37] : memref<8x342xf32, #tpu.memory_space<vmem>>, vector<4x16xf32>
    tpu.vector_store %arg9[%c0_49, %c37], %51 {strides = array<i32>} : memref<8x342xf32, #tpu.memory_space<vmem>>, vector<4x16xf32>,
    %53 = vector.extract_strided_slice %50 {offsets = [0, 16], sizes = [4, 16], strides = [1, 1]} : vector<4x128xf32> to vector<4x16xf32>
    %c0_50 = arith.constant 0 : index
    %c73 = arith.constant 73 : index
    %54 = vector.load %arg9[%c0_50, %c73] : memref<8x342xf32, #tpu.memory_space<vmem>>, vector<4x16xf32>
    tpu.vector_store %arg9[%c0_50, %c73], %53 {strides = array<i32>} : memref<8x342xf32, #tpu.memory_space<vmem>>, vector<4x16xf32>,
    %55 = vector.extract_strided_slice %50 {offsets = [0, 32], sizes = [4, 16], strides = [1, 1]} : vector<4x128xf32> to vector<4x16xf32>
    %c0_51 = arith.constant 0 : index
    %c109 = arith.constant 109 : index
    %56 = vector.load %arg9[%c0_51, %c109] : memref<8x342xf32, #tpu.memory_space<vmem>>, vector<4x16xf32>
    tpu.vector_store %arg9[%c0_51, %c109], %55 {strides = array<i32>} : memref<8x342xf32, #tpu.memory_space<vmem>>, vector<4x16xf32>,
    %57 = vector.extract_strided_slice %50 {offsets = [0, 48], sizes = [4, 16], strides = [1, 1]} : vector<4x128xf32> to vector<4x16xf32>
    %c0_52 = arith.constant 0 : index
    %c145 = arith.constant 145 : index
    %58 = vector.load %arg9[%c0_52, %c145] : memref<8x342xf32, #tpu.memory_space<vmem>>, vector<4x16xf32>
    tpu.vector_store %arg9[%c0_52, %c145], %57 {strides = array<i32>} : memref<8x342xf32, #tpu.memory_space<vmem>>, vector<4x16xf32>,
    %59 = vector.extract_strided_slice %50 {offsets = [0, 64], sizes = [4, 16], strides = [1, 1]} : vector<4x128xf32> to vector<4x16xf32>
    %c0_53 = arith.constant 0 : index
    %c181 = arith.constant 181 : index
    %60 = vector.load %arg9[%c0_53, %c181] : memref<8x342xf32, #tpu.memory_space<vmem>>, vector<4x16xf32>
    tpu.vector_store %arg9[%c0_53, %c181], %59 {strides = array<i32>} : memref<8x342xf32, #tpu.memory_space<vmem>>, vector<4x16xf32>,
    %61 = vector.extract_strided_slice %50 {offsets = [0, 80], sizes = [4, 16], strides = [1, 1]} : vector<4x128xf32> to vector<4x16xf32>
    %c0_54 = arith.constant 0 : index
    %c217 = arith.constant 217 : index
    %62 = vector.load %arg9[%c0_54, %c217] : memref<8x342xf32, #tpu.memory_space<vmem>>, vector<4x16xf32>
    tpu.vector_store %arg9[%c0_54, %c217], %61 {strides = array<i32>} : memref<8x342xf32, #tpu.memory_space<vmem>>, vector<4x16xf32>,
    %63 = vector.extract_strided_slice %50 {offsets = [0, 96], sizes = [4, 16], strides = [1, 1]} : vector<4x128xf32> to vector<4x16xf32>
    %c0_55 = arith.constant 0 : index
    %c253 = arith.constant 253 : index
    %64 = vector.load %arg9[%c0_55, %c253] : memref<8x342xf32, #tpu.memory_space<vmem>>, vector<4x16xf32>
    tpu.vector_store %arg9[%c0_55, %c253], %63 {strides = array<i32>} : memref<8x342xf32, #tpu.memory_space<vmem>>, vector<4x16xf32>,
    %65 = vector.extract_strided_slice %50 {offsets = [0, 112], sizes = [4, 16], strides = [1, 1]} : vector<4x128xf32> to vector<4x16xf32>
    %c0_56 = arith.constant 0 : index
    %c289 = arith.constant 289 : index
    %66 = vector.load %arg9[%c0_56, %c289] : memref<8x342xf32, #tpu.memory_space<vmem>>, vector<4x16xf32>
    tpu.vector_store %arg9[%c0_56, %c289], %65 {strides = array<i32>} : memref<8x342xf32, #tpu.memory_space<vmem>>, vector<4x16xf32>,
    %c0_57 = arith.constant 0 : index
    %c0_58 = arith.constant 0 : index
    %c0_59 = arith.constant 0 : index
    %67 = vector.load %arg2[%c0_57, %c0_58, %c0_59] : memref<1x4x256xf32, #tpu.memory_space<vmem>>, vector<1x4x256xf32>
    %68 = vector.shape_cast %67 : vector<1x4x256xf32> to vector<4x256xf32>
    %69 = vector.extract_strided_slice %68 {offsets = [0, 0], sizes = [4, 16], strides = [1, 1]} : vector<4x256xf32> to vector<4x16xf32>
    %c4 = arith.constant 4 : index
    %c19_60 = arith.constant 19 : index
    %70 = vector.load %arg9[%c4, %c19_60] : memref<8x342xf32, #tpu.memory_space<vmem>>, vector<4x16xf32>
    tpu.vector_store %arg9[%c4, %c19_60], %69 {strides = array<i32>} : memref<8x342xf32, #tpu.memory_space<vmem>>, vector<4x16xf32>,
    %71 = vector.extract_strided_slice %68 {offsets = [0, 16], sizes = [4, 16], strides = [1, 1]} : vector<4x256xf32> to vector<4x16xf32>
    %c4_61 = arith.constant 4 : index
    %c37_62 = arith.constant 37 : index
    %72 = vector.load %arg9[%c4_61, %c37_62] : memref<8x342xf32, #tpu.memory_space<vmem>>, vector<4x16xf32>
    tpu.vector_store %arg9[%c4_61, %c37_62], %71 {strides = array<i32>} : memref<8x342xf32, #tpu.memory_space<vmem>>, vector<4x16xf32>,
    %73 = vector.extract_strided_slice %68 {offsets = [0, 32], sizes = [4, 16], strides = [1, 1]} : vector<4x256xf32> to vector<4x16xf32>
    %c4_63 = arith.constant 4 : index
    %c55_64 = arith.constant 55 : index
    %74 = vector.load %arg9[%c4_63, %c55_64] : memref<8x342xf32, #tpu.memory_space<vmem>>, vector<4x16xf32>
    tpu.vector_store %arg9[%c4_63, %c55_64], %73 {strides = array<i32>} : memref<8x342xf32, #tpu.memory_space<vmem>>, vector<4x16xf32>,
    %75 = vector.extract_strided_slice %68 {offsets = [0, 48], sizes = [4, 16], strides = [1, 1]} : vector<4x256xf32> to vector<4x16xf32>
    %c4_65 = arith.constant 4 : index
    %c73_66 = arith.constant 73 : index
    %76 = vector.load %arg9[%c4_65, %c73_66] : memref<8x342xf32, #tpu.memory_space<vmem>>, vector<4x16xf32>
    tpu.vector_store %arg9[%c4_65, %c73_66], %75 {strides = array<i32>} : memref<8x342xf32, #tpu.memory_space<vmem>>, vector<4x16xf32>,
    %77 = vector.extract_strided_slice %68 {offsets = [0, 64], sizes = [4, 16], strides = [1, 1]} : vector<4x256xf32> to vector<4x16xf32>
    %c4_67 = arith.constant 4 : index
    %c91_68 = arith.constant 91 : index
    %78 = vector.load %arg9[%c4_67, %c91_68] : memref<8x342xf32, #tpu.memory_space<vmem>>, vector<4x16xf32>
    tpu.vector_store %arg9[%c4_67, %c91_68], %77 {strides = array<i32>} : memref<8x342xf32, #tpu.memory_space<vmem>>, vector<4x16xf32>,
    %79 = vector.extract_strided_slice %68 {offsets = [0, 80], sizes = [4, 16], strides = [1, 1]} : vector<4x256xf32> to vector<4x16xf32>
    %c4_69 = arith.constant 4 : index
    %c109_70 = arith.constant 109 : index
    %80 = vector.load %arg9[%c4_69, %c109_70] : memref<8x342xf32, #tpu.memory_space<vmem>>, vector<4x16xf32>
    tpu.vector_store %arg9[%c4_69, %c109_70], %79 {strides = array<i32>} : memref<8x342xf32, #tpu.memory_space<vmem>>, vector<4x16xf32>,
    %81 = vector.extract_strided_slice %68 {offsets = [0, 96], sizes = [4, 16], strides = [1, 1]} : vector<4x256xf32> to vector<4x16xf32>
    %c4_71 = arith.constant 4 : index
    %c127_72 = arith.constant 127 : index
    %82 = vector.load %arg9[%c4_71, %c127_72] : memref<8x342xf32, #tpu.memory_space<vmem>>, vector<4x16xf32>
    tpu.vector_store %arg9[%c4_71, %c127_72], %81 {strides = array<i32>} : memref<8x342xf32, #tpu.memory_space<vmem>>, vector<4x16xf32>,
    %83 = vector.extract_strided_slice %68 {offsets = [0, 112], sizes = [4, 16], strides = [1, 1]} : vector<4x256xf32> to vector<4x16xf32>
    %c4_73 = arith.constant 4 : index
    %c145_74 = arith.constant 145 : index
    %84 = vector.load %arg9[%c4_73, %c145_74] : memref<8x342xf32, #tpu.memory_space<vmem>>, vector<4x16xf32>
    tpu.vector_store %arg9[%c4_73, %c145_74], %83 {strides = array<i32>} : memref<8x342xf32, #tpu.memory_space<vmem>>, vector<4x16xf32>,
    %85 = vector.extract_strided_slice %68 {offsets = [0, 128], sizes = [4, 16], strides = [1, 1]} : vector<4x256xf32> to vector<4x16xf32>
    %c4_75 = arith.constant 4 : index
    %c163_76 = arith.constant 163 : index
    %86 = vector.load %arg9[%c4_75, %c163_76] : memref<8x342xf32, #tpu.memory_space<vmem>>, vector<4x16xf32>
    tpu.vector_store %arg9[%c4_75, %c163_76], %85 {strides = array<i32>} : memref<8x342xf32, #tpu.memory_space<vmem>>, vector<4x16xf32>,
    %87 = vector.extract_strided_slice %68 {offsets = [0, 144], sizes = [4, 16], strides = [1, 1]} : vector<4x256xf32> to vector<4x16xf32>
    %c4_77 = arith.constant 4 : index
    %c181_78 = arith.constant 181 : index
    %88 = vector.load %arg9[%c4_77, %c181_78] : memref<8x342xf32, #tpu.memory_space<vmem>>, vector<4x16xf32>
    tpu.vector_store %arg9[%c4_77, %c181_78], %87 {strides = array<i32>} : memref<8x342xf32, #tpu.memory_space<vmem>>, vector<4x16xf32>,
    %89 = vector.extract_strided_slice %68 {offsets = [0, 160], sizes = [4, 16], strides = [1, 1]} : vector<4x256xf32> to vector<4x16xf32>
    %c4_79 = arith.constant 4 : index
    %c199_80 = arith.constant 199 : index
    %90 = vector.load %arg9[%c4_79, %c199_80] : memref<8x342xf32, #tpu.memory_space<vmem>>, vector<4x16xf32>
    tpu.vector_store %arg9[%c4_79, %c199_80], %89 {strides = array<i32>} : memref<8x342xf32, #tpu.memory_space<vmem>>, vector<4x16xf32>,
    %91 = vector.extract_strided_slice %68 {offsets = [0, 176], sizes = [4, 16], strides = [1, 1]} : vector<4x256xf32> to vector<4x16xf32>
    %c4_81 = arith.constant 4 : index
    %c217_82 = arith.constant 217 : index
    %92 = vector.load %arg9[%c4_81, %c217_82] : memref<8x342xf32, #tpu.memory_space<vmem>>, vector<4x16xf32>
    tpu.vector_store %arg9[%c4_81, %c217_82], %91 {strides = array<i32>} : memref<8x342xf32, #tpu.memory_space<vmem>>, vector<4x16xf32>,
    %93 = vector.extract_strided_slice %68 {offsets = [0, 192], sizes = [4, 16], strides = [1, 1]} : vector<4x256xf32> to vector<4x16xf32>
    %c4_83 = arith.constant 4 : index
    %c235_84 = arith.constant 235 : index
    %94 = vector.load %arg9[%c4_83, %c235_84] : memref<8x342xf32, #tpu.memory_space<vmem>>, vector<4x16xf32>
    tpu.vector_store %arg9[%c4_83, %c235_84], %93 {strides = array<i32>} : memref<8x342xf32, #tpu.memory_space<vmem>>, vector<4x16xf32>,
    %95 = vector.extract_strided_slice %68 {offsets = [0, 208], sizes = [4, 16], strides = [1, 1]} : vector<4x256xf32> to vector<4x16xf32>
    %c4_85 = arith.constant 4 : index
    %c253_86 = arith.constant 253 : index
    %96 = vector.load %arg9[%c4_85, %c253_86] : memref<8x342xf32, #tpu.memory_space<vmem>>, vector<4x16xf32>
    tpu.vector_store %arg9[%c4_85, %c253_86], %95 {strides = array<i32>} : memref<8x342xf32, #tpu.memory_space<vmem>>, vector<4x16xf32>,
    %97 = vector.extract_strided_slice %68 {offsets = [0, 224], sizes = [4, 16], strides = [1, 1]} : vector<4x256xf32> to vector<4x16xf32>
    %c4_87 = arith.constant 4 : index
    %c271_88 = arith.constant 271 : index
    %98 = vector.load %arg9[%c4_87, %c271_88] : memref<8x342xf32, #tpu.memory_space<vmem>>, vector<4x16xf32>
    tpu.vector_store %arg9[%c4_87, %c271_88], %97 {strides = array<i32>} : memref<8x342xf32, #tpu.memory_space<vmem>>, vector<4x16xf32>,
    %99 = vector.extract_strided_slice %68 {offsets = [0, 240], sizes = [4, 16], strides = [1, 1]} : vector<4x256xf32> to vector<4x16xf32>
    %c4_89 = arith.constant 4 : index
    %c289_90 = arith.constant 289 : index
    %100 = vector.load %arg9[%c4_89, %c289_90] : memref<8x342xf32, #tpu.memory_space<vmem>>, vector<4x16xf32>
    tpu.vector_store %arg9[%c4_89, %c289_90], %99 {strides = array<i32>} : memref<8x342xf32, #tpu.memory_space<vmem>>, vector<4x16xf32>,
    %cst_91 = arith.constant 0.000000e+00 : f32
    %101 = vector.broadcast %cst_91 : f32 to vector<4x288xf32>
    %c0_92 = arith.constant 0 : index
    %c0_93 = arith.constant 0 : index
    %102 = vector.load %arg9[%c0_92, %c0_93] : memref<8x342xf32, #tpu.memory_space<vmem>>, vector<8x288xf32>
    %c0_94 = arith.constant 0 : index
    %c0_95 = arith.constant 0 : index
    %c0_96 = arith.constant 0 : index
    %103 = vector.load %arg5[%c0_94, %c0_95, %c0_96] : memref<9x4x8xf32, #tpu.memory_space<vmem>>, vector<1x4x8xf32>
    %104 = vector.shape_cast %103 : vector<1x4x8xf32> to vector<4x8xf32>
    %cst_97 = arith.constant dense<0.000000e+00> : vector<4x288xf32>
    %105 = tpu.matmul %104, %102, %cst_97 {dimension_numbers = #tpu.dot_dimension_numbers<[1], [0], [0], [1], [0, 0, 1, 1], [], []>} : vector<4x8xf32>, vector<8x288xf32>, vector<4x288xf32> -> vector<4x288xf32>
    %106 = arith.addf %101, %105 : vector<4x288xf32>
    %c0_98 = arith.constant 0 : index
    %c1_99 = arith.constant 1 : index
    %107 = vector.load %arg9[%c0_98, %c1_99] : memref<8x342xf32, #tpu.memory_space<vmem>>, vector<8x288xf32>
    %c1_100 = arith.constant 1 : index
    %c0_101 = arith.constant 0 : index
    %c0_102 = arith.constant 0 : index
    %108 = vector.load %arg5[%c1_100, %c0_101, %c0_102] : memref<9x4x8xf32, #tpu.memory_space<vmem>>, vector<1x4x8xf32>
    %109 = vector.shape_cast %108 : vector<1x4x8xf32> to vector<4x8xf32>
    %cst_103 = arith.constant dense<0.000000e+00> : vector<4x288xf32>
    %110 = tpu.matmul %109, %107, %cst_103 {dimension_numbers = #tpu.dot_dimension_numbers<[1], [0], [0], [1], [0, 0, 1, 1], [], []>} : vector<4x8xf32>, vector<8x288xf32>, vector<4x288xf32> -> vector<4x288xf32>
    %111 = arith.addf %106, %110 : vector<4x288xf32>
    %c0_104 = arith.constant 0 : index
    %c2 = arith.constant 2 : index
    %112 = vector.load %arg9[%c0_104, %c2] : memref<8x342xf32, #tpu.memory_space<vmem>>, vector<8x288xf32>
    %c2_105 = arith.constant 2 : index
    %c0_106 = arith.constant 0 : index
    %c0_107 = arith.constant 0 : index
    %113 = vector.load %arg5[%c2_105, %c0_106, %c0_107] : memref<9x4x8xf32, #tpu.memory_space<vmem>>, vector<1x4x8xf32>
    %114 = vector.shape_cast %113 : vector<1x4x8xf32> to vector<4x8xf32>
    %cst_108 = arith.constant dense<0.000000e+00> : vector<4x288xf32>
    %115 = tpu.matmul %114, %112, %cst_108 {dimension_numbers = #tpu.dot_dimension_numbers<[1], [0], [0], [1], [0, 0, 1, 1], [], []>} : vector<4x8xf32>, vector<8x288xf32>, vector<4x288xf32> -> vector<4x288xf32>
    %116 = arith.addf %111, %115 : vector<4x288xf32>
    %c0_109 = arith.constant 0 : index
    %c18 = arith.constant 18 : index
    %117 = vector.load %arg9[%c0_109, %c18] : memref<8x342xf32, #tpu.memory_space<vmem>>, vector<8x288xf32>
    %c3 = arith.constant 3 : index
    %c0_110 = arith.constant 0 : index
    %c0_111 = arith.constant 0 : index
    %118 = vector.load %arg5[%c3, %c0_110, %c0_111] : memref<9x4x8xf32, #tpu.memory_space<vmem>>, vector<1x4x8xf32>
    %119 = vector.shape_cast %118 : vector<1x4x8xf32> to vector<4x8xf32>
    %cst_112 = arith.constant dense<0.000000e+00> : vector<4x288xf32>
    %120 = tpu.matmul %119, %117, %cst_112 {dimension_numbers = #tpu.dot_dimension_numbers<[1], [0], [0], [1], [0, 0, 1, 1], [], []>} : vector<4x8xf32>, vector<8x288xf32>, vector<4x288xf32> -> vector<4x288xf32>
    %121 = arith.addf %116, %120 : vector<4x288xf32>
    %c0_113 = arith.constant 0 : index
    %c19_114 = arith.constant 19 : index
    %122 = vector.load %arg9[%c0_113, %c19_114] : memref<8x342xf32, #tpu.memory_space<vmem>>, vector<8x288xf32>
    %c4_115 = arith.constant 4 : index
    %c0_116 = arith.constant 0 : index
    %c0_117 = arith.constant 0 : index
    %123 = vector.load %arg5[%c4_115, %c0_116, %c0_117] : memref<9x4x8xf32, #tpu.memory_space<vmem>>, vector<1x4x8xf32>
    %124 = vector.shape_cast %123 : vector<1x4x8xf32> to vector<4x8xf32>
    %cst_118 = arith.constant dense<0.000000e+00> : vector<4x288xf32>
    %125 = tpu.matmul %124, %122, %cst_118 {dimension_numbers = #tpu.dot_dimension_numbers<[1], [0], [0], [1], [0, 0, 1, 1], [], []>} : vector<4x8xf32>, vector<8x288xf32>, vector<4x288xf32> -> vector<4x288xf32>
    %126 = arith.addf %121, %125 : vector<4x288xf32>
    %c0_119 = arith.constant 0 : index
    %c20 = arith.constant 20 : index
    %127 = vector.load %arg9[%c0_119, %c20] : memref<8x342xf32, #tpu.memory_space<vmem>>, vector<8x288xf32>
    %c5 = arith.constant 5 : index
    %c0_120 = arith.constant 0 : index
    %c0_121 = arith.constant 0 : index
    %128 = vector.load %arg5[%c5, %c0_120, %c0_121] : memref<9x4x8xf32, #tpu.memory_space<vmem>>, vector<1x4x8xf32>
    %129 = vector.shape_cast %128 : vector<1x4x8xf32> to vector<4x8xf32>
    %cst_122 = arith.constant dense<0.000000e+00> : vector<4x288xf32>
    %130 = tpu.matmul %129, %127, %cst_122 {dimension_numbers = #tpu.dot_dimension_numbers<[1], [0], [0], [1], [0, 0, 1, 1], [], []>} : vector<4x8xf32>, vector<8x288xf32>, vector<4x288xf32> -> vector<4x288xf32>
    %131 = arith.addf %126, %130 : vector<4x288xf32>
    %c0_123 = arith.constant 0 : index
    %c36 = arith.constant 36 : index
    %132 = vector.load %arg9[%c0_123, %c36] : memref<8x342xf32, #tpu.memory_space<vmem>>, vector<8x288xf32>
    %c6 = arith.constant 6 : index
    %c0_124 = arith.constant 0 : index
    %c0_125 = arith.constant 0 : index
    %133 = vector.load %arg5[%c6, %c0_124, %c0_125] : memref<9x4x8xf32, #tpu.memory_space<vmem>>, vector<1x4x8xf32>
    %134 = vector.shape_cast %133 : vector<1x4x8xf32> to vector<4x8xf32>
    %cst_126 = arith.constant dense<0.000000e+00> : vector<4x288xf32>
    %135 = tpu.matmul %134, %132, %cst_126 {dimension_numbers = #tpu.dot_dimension_numbers<[1], [0], [0], [1], [0, 0, 1, 1], [], []>} : vector<4x8xf32>, vector<8x288xf32>, vector<4x288xf32> -> vector<4x288xf32>
    %136 = arith.addf %131, %135 : vector<4x288xf32>
    %c0_127 = arith.constant 0 : index
    %c37_128 = arith.constant 37 : index
    %137 = vector.load %arg9[%c0_127, %c37_128] : memref<8x342xf32, #tpu.memory_space<vmem>>, vector<8x288xf32>
    %c7 = arith.constant 7 : index
    %c0_129 = arith.constant 0 : index
    %c0_130 = arith.constant 0 : index
    %138 = vector.load %arg5[%c7, %c0_129, %c0_130] : memref<9x4x8xf32, #tpu.memory_space<vmem>>, vector<1x4x8xf32>
    %139 = vector.shape_cast %138 : vector<1x4x8xf32> to vector<4x8xf32>
    %cst_131 = arith.constant dense<0.000000e+00> : vector<4x288xf32>
    %140 = tpu.matmul %139, %137, %cst_131 {dimension_numbers = #tpu.dot_dimension_numbers<[1], [0], [0], [1], [0, 0, 1, 1], [], []>} : vector<4x8xf32>, vector<8x288xf32>, vector<4x288xf32> -> vector<4x288xf32>
    %141 = arith.addf %136, %140 : vector<4x288xf32>
    %c0_132 = arith.constant 0 : index
    %c38 = arith.constant 38 : index
    %142 = vector.load %arg9[%c0_132, %c38] : memref<8x342xf32, #tpu.memory_space<vmem>>, vector<8x288xf32>
    %c8 = arith.constant 8 : index
    %c0_133 = arith.constant 0 : index
    %c0_134 = arith.constant 0 : index
    %143 = vector.load %arg5[%c8, %c0_133, %c0_134] : memref<9x4x8xf32, #tpu.memory_space<vmem>>, vector<1x4x8xf32>
    %144 = vector.shape_cast %143 : vector<1x4x8xf32> to vector<4x8xf32>
    %cst_135 = arith.constant dense<0.000000e+00> : vector<4x288xf32>
    %145 = tpu.matmul %144, %142, %cst_135 {dimension_numbers = #tpu.dot_dimension_numbers<[1], [0], [0], [1], [0, 0, 1, 1], [], []>} : vector<4x8xf32>, vector<8x288xf32>, vector<4x288xf32> -> vector<4x288xf32>
    %146 = arith.addf %141, %145 : vector<4x288xf32>
    %147 = vector.extract_strided_slice %146 {offsets = [0, 0], sizes = [4, 16], strides = [1, 1]} : vector<4x288xf32> to vector<4x16xf32>
    %148 = vector.extract_strided_slice %146 {offsets = [0, 18], sizes = [4, 16], strides = [1, 1]} : vector<4x288xf32> to vector<4x16xf32>
    %149 = vector.extract_strided_slice %146 {offsets = [0, 36], sizes = [4, 16], strides = [1, 1]} : vector<4x288xf32> to vector<4x16xf32>
    %150 = vector.extract_strided_slice %146 {offsets = [0, 54], sizes = [4, 16], strides = [1, 1]} : vector<4x288xf32> to vector<4x16xf32>
    %151 = vector.extract_strided_slice %146 {offsets = [0, 72], sizes = [4, 16], strides = [1, 1]} : vector<4x288xf32> to vector<4x16xf32>
    %152 = vector.extract_strided_slice %146 {offsets = [0, 90], sizes = [4, 16], strides = [1, 1]} : vector<4x288xf32> to vector<4x16xf32>
    %153 = vector.extract_strided_slice %146 {offsets = [0, 108], sizes = [4, 16], strides = [1, 1]} : vector<4x288xf32> to vector<4x16xf32>
    %154 = vector.extract_strided_slice %146 {offsets = [0, 126], sizes = [4, 16], strides = [1, 1]} : vector<4x288xf32> to vector<4x16xf32>
    %155 = vector.extract_strided_slice %146 {offsets = [0, 144], sizes = [4, 16], strides = [1, 1]} : vector<4x288xf32> to vector<4x16xf32>
    %156 = vector.extract_strided_slice %146 {offsets = [0, 162], sizes = [4, 16], strides = [1, 1]} : vector<4x288xf32> to vector<4x16xf32>
    %157 = vector.extract_strided_slice %146 {offsets = [0, 180], sizes = [4, 16], strides = [1, 1]} : vector<4x288xf32> to vector<4x16xf32>
    %158 = vector.extract_strided_slice %146 {offsets = [0, 198], sizes = [4, 16], strides = [1, 1]} : vector<4x288xf32> to vector<4x16xf32>
    %159 = vector.extract_strided_slice %146 {offsets = [0, 216], sizes = [4, 16], strides = [1, 1]} : vector<4x288xf32> to vector<4x16xf32>
    %160 = vector.extract_strided_slice %146 {offsets = [0, 234], sizes = [4, 16], strides = [1, 1]} : vector<4x288xf32> to vector<4x16xf32>
    %161 = vector.extract_strided_slice %146 {offsets = [0, 252], sizes = [4, 16], strides = [1, 1]} : vector<4x288xf32> to vector<4x16xf32>
    %162 = vector.extract_strided_slice %146 {offsets = [0, 270], sizes = [4, 16], strides = [1, 1]} : vector<4x288xf32> to vector<4x16xf32>
    %163 = tpu.concatenate %147, %148, %149, %150, %151, %152, %153, %154, %155, %156, %157, %158, %159, %160, %161, %162 in 1 : vector<4x16xf32>, vector<4x16xf32>, vector<4x16xf32>, vector<4x16xf32>, vector<4x16xf32>, vector<4x16xf32>, vector<4x16xf32>, vector<4x16xf32>, vector<4x16xf32>, vector<4x16xf32>, vector<4x16xf32>, vector<4x16xf32>, vector<4x16xf32>, vector<4x16xf32>, vector<4x16xf32>, vector<4x16xf32> -> vector<4x256xf32>
    %c0_136 = arith.constant 0 : index
    %c0_137 = arith.constant 0 : index
    %164 = vector.load %arg6[%c0_136, %c0_137] : memref<4x1xf32, #tpu.memory_space<vmem>>, vector<4x1xf32>
    %165 = vector.broadcast %164 : vector<4x1xf32> to vector<4x256xf32>
    %166 = arith.addf %163, %165 : vector<4x256xf32>
    %c0_138 = arith.constant 0 : index
    %c0_139 = arith.constant 0 : index
    %c0_140 = arith.constant 0 : index
    %167 = vector.load %arg8[%c0_138, %c0_139, %c0_140] : memref<1x4x256xf32, #tpu.memory_space<vmem>>, vector<1x4x256xf32>
    %168 = vector.shape_cast %167 : vector<1x4x256xf32> to vector<4x256xf32>
    %169 = vector.shape_cast %166 : vector<4x256xf32> to vector<1x4x256xf32>
    tpu.vector_store %arg8[%c0_138, %c0_139, %c0_140], %169 {strides = array<i32>} : memref<1x4x256xf32, #tpu.memory_space<vmem>>, vector<1x4x256xf32>,
    return
  }
  func.func @transform_0(%arg0: i32) -> (i32, i32, i32) {
    %c0_i32 = arith.constant 0 : i32
    %c0_i32_0 = arith.constant 0 : i32
    %c0_i32_1 = arith.constant 0 : i32
    return %arg0, %c0_i32, %c0_i32_0 : i32, i32, i32
  }
  func.func @transform_1(%arg0: i32) -> (i32, i32, i32) {
    %c0_i32 = arith.constant 0 : i32
    %c0_i32_0 = arith.constant 0 : i32
    %c0_i32_1 = arith.constant 0 : i32
    return %arg0, %c0_i32, %c0_i32_0 : i32, i32, i32
  }
  func.func @transform_2(%arg0: i32) -> (i32, i32, i32, i32) {
    %c0_i32 = arith.constant 0 : i32
    %c0_i32_0 = arith.constant 0 : i32
    %c0_i32_1 = arith.constant 0 : i32
    %c0_i32_2 = arith.constant 0 : i32
    %c0_i32_3 = arith.constant 0 : i32
    return %c0_i32, %c0_i32_0, %c0_i32_1, %c0_i32_2 : i32, i32, i32, i32
  }
  func.func @transform_3(%arg0: i32) -> (i32, i32) {
    %c0_i32 = arith.constant 0 : i32
    %c0_i32_0 = arith.constant 0 : i32
    %c0_i32_1 = arith.constant 0 : i32
    return %c0_i32, %c0_i32_0 : i32, i32
  }
  func.func @transform_4(%arg0: i32) -> (i32, i32, i32) {
    %c0_i32 = arith.constant 0 : i32
    %c0_i32_0 = arith.constant 0 : i32
    %c0_i32_1 = arith.constant 0 : i32
    %c0_i32_2 = arith.constant 0 : i32
    return %c0_i32, %c0_i32_0, %c0_i32_1 : i32, i32, i32
  }
  func.func @transform_5(%arg0: i32) -> (i32, i32) {
    %c0_i32 = arith.constant 0 : i32
    %c0_i32_0 = arith.constant 0 : i32
    %c0_i32_1 = arith.constant 0 : i32
    return %c0_i32, %c0_i32_0 : i32, i32
  }
  func.func @transform_6(%arg0: i32) -> (i32, i32, i32) {
    %c0_i32 = arith.constant 0 : i32
    %c0_i32_0 = arith.constant 0 : i32
    %c0_i32_1 = arith.constant 0 : i32
    %c0_i32_2 = arith.constant 0 : i32
    return %c0_i32, %c0_i32_0, %c0_i32_1 : i32, i32, i32
  }
  func.func @transform_7(%arg0: i32) -> (i32, i32, i32) {
    %c0_i32 = arith.constant 0 : i32
    %c0_i32_0 = arith.constant 0 : i32
    %c0_i32_1 = arith.constant 0 : i32
    return %arg0, %c0_i32, %c0_i32_0 : i32, i32, i32
  }
}

</mosaic_0001>

<bundles_post_ra>
// kernel: tpu_custom_call.1
= control target key start
LH: loop header
LB: loop body
LE: loop exit
PB: predicated region body
PF: predicated region fallthrough
CT: control target
= control target key end

     0   :  { %12 = vsyncpa [#allocation4], 0  ;;  %s3703_s0 = inlined_call_operand.vmem [shape: f32[2,8,64], index: 0, kind: input, shape index: {}]   ;;  %s3704_s1 = inlined_call_operand.vmem [shape: f32[2,4,256], index: 1, kind: input, shape index: {}]   ;;  %s3705_s2 = inlined_call_operand.vmem [shape: f32[2,2,4,8], index: 2, kind: input, shape index: {}]   ;;  %s3706_s3 = inlined_call_operand.vmem [shape: f32[4,1], index: 3, kind: input, shape index: {}]   ;;  %s3707_s4 = inlined_call_operand.vmem [shape: f32[9,4,8], index: 4, kind: input, shape index: {}]   ;;  %s3708_s5 = inlined_call_operand.vmem [shape: f32[4,1], index: 5, kind: input, shape index: {}]   ;;  %s3709_s6 = inlined_call_operand.hbm [shape: f32[2,64,128], index: 6, kind: input, shape index: {}]   ;;  %s3710_s7 = inlined_call_operand.hbm [shape: f32[2,4,256], index: 7, kind: output, shape index: {}]  }
   0x1   :  { %13 = vsyncpa [#allocation5], 0 }
   0x2   :  { %15 = vsyncpa [#allocation5 + $0x1], 0  ;;  %s3289_s24 = smov 0   ;;  %s3291_s25 = smov 0  }
   0x3   :  { %s3293_s26 = smov 0   ;;  %s3295_s27 = smov 0  }
   0x4 LB: > { %s3310_s28 = sadd.s32 4294967295, %s3194_s27   ;;  %s2744_s29 = sadd.s32 4294967294, %s3194_s27   ;;  %s3194_s27 = sphi %s3295_s27, %s3718_s27   ;;  %s3190_s26 = sphi %s3293_s26, %s3717_s26   ;;  %s3186_s25 = sphi %s3291_s25, %s3716_s25   ;;  %s3182_s24 = sphi %s3289_s24, %s3715_s24  }
   0x5   : > { %s3314_s30 = sadd.s32 1, %s3194_s27   ;;  %s185_s8 = sadd.s32 1, %s3190_s26 }
   0x6   : > { %s182_s9 = ssub.s32 %s3194_s27, %s3314_s30  ;;  %p195_p0 = scmp.ne.s32.totalorder %s3190_s26, %s3186_s25 }
   0x7   : > { %p183_p1 = scmp.eq.s32.totalorder %s182_s9, 0  ;;  %p196_p2 = scmp.eq.s32.totalorder %s3310_s28, 1 }
   0x8   : > { %p201_p3 = scmp.ne.s32.totalorder %s3186_s25, %s3182_s24  ;;  %p202_p4 = scmp.eq.s32.totalorder %s2744_s29, 1 }
   0x9   : > { %s3325_s10 = scalar_select %p183_p1, %s3190_s26, %s185_s8  }
   0xa   : > { %p3327_p5 = por %p196_p2, %p195_p0  ;;  %p3331_p6 = por %p202_p4, %p201_p3 }
   0xb   : > { %p2745_p7 = scmp.ge.s32.totalorder %s3194_s27, 1  ;;  %p209_p8 = scmp.lt.s32.totalorder %s3194_s27, 3 }
   0xc   : > { %s3712_s12 = scalar_select %p3331_p6, 1, 0 }
   0xd   : > { %p3015_p9 = scmp.eq.s32.totalorder %s3310_s28, 0  ;;  %p3338_p10 = pnand %p2745_p7, %p209_p8 }
   0xe   : > { %s3196_s14 = smov [#allocation3]  }
   0xf   : > { %s233_s15 = sshll.u32 %s3196_s14, 4  ;;  %p3007_p11 = pneg %p3338_p10  ;;  %s234_s15 = int_to_ptr.vmem [resolvable:$true] %s233_s15 }
  0x10   : > { %s3115_s16 = scalar_lea.vmem %s234_s15, 2048  ;;  %p3123_p3 = scmp.lt.s32.totalorder %s234_s15, %s234_s15 }
  0x11   : > { %p3008_p12 = pnand %p3015_p9, %p3007_p11  ;;  %p3116_p0 = scmp.ne.s32.totalorder %s234_s15, %s3115_s16 }
  0x12   : > { %p3124_p4 = scmp.lt.s32.totalorder %s3115_s16, %s3115_s16 }
  0x13   : > { %p3106_p13 = pneg %p3008_p12 }
  0x14   : > { %p3125_p6 = por %p3124_p4, %p3123_p3 }
  0x15   : > { %p3118_p1 = pnand %p3116_p0, %p3106_p13 }
  0x17   : > { %p3119_p2 = pneg %p3118_p1 }
  0x19   : > { %p3126_p7 = pnand %p3125_p6, %p3119_p2 }
  0x1b   : > { %3129 = shalt.err (!%p3126_p7)
}
  0x1c   : > { %s3197_s17 = smov 128   ;;  %s3198_s18 = smov 8  }
  0x1d   : > { %3010 = dma.hbm_to_vmem [thread:$0]  (!%p3008_p12), %s3709_s6, 2048, %s234_s15, [#allocation4], %s3197_s17, %s3197_s17, %s3198_s18  }
  0x1e   : > { %264 = sbr.rel (%p3338_p10) target bundleno = 1294 (0x50e), region = 48 }
  0x23   : > { %3173 = dma.done.wait (%p3015_p9), [#allocation4], 2048  }
  0x24   : > { %3175 = vsyncadd (%p3015_p9), [#allocation4], 4294965248  ;;  %p300_p8 = scmp.lt.s32.totalorder %s3310_s28, 1  ;;  %v3199_v0 = vmov 0.0   ;;  %vm3200_vm0 = vmmov 0   ;;  %vm316_vm1 = vcmask 64512  }
  0x25   : > { %2860 = vmatprep.subr.mxu0 %v3199_v0  ;;  %309 = vst [vmem:[#allocation2] sm:$0xff] %v3199_v0  ;;  %310 = vst [vmem:[#allocation2 + $0x8] sm:$0xff] %v3199_v0  ;;  %2865 = vmatprep.subr.mxu1 %v3199_v0  ;;  %v315_v2 = vld [vmem:[%s3705_s2] sm:$0xf]  ;;  %v2755_v3 = vld [vmem:[%s3705_s2 + $0x4] sm:$0xf] }
  0x26   : > { %s3361_s21 = scalar_select %p300_p8, %s3310_s28, 1  ;;  %2862 = vmatprep.mubr.msk.f32.mxu0 %vm3200_vm0, %v3199_v0  ;;  %2867 = vmatprep.mubr.msk.f32.mxu1 %vm3200_vm0, %v3199_v0  ;;  %v3383_v4 = vld [vmem:[#allocation3 + $0x78] sm:$0xff]  ;;  %v3391_v6 = vld [vmem:[#allocation3 + $0x70] sm:$0xff]  ;;  %v3399_v8 = vld [vmem:[#allocation3 + $0x68] sm:$0xff]  ;;  %v3201_v23 = vmov 0   ;;  %vm482_vm2 = vcmask 523264  }
  0x27   : > { %v3385_v5 = vld [vmem:[#allocation3 + $0x38] sm:$0xff]  ;;  %v3393_v7 = vld [vmem:[#allocation3 + $0x30] sm:$0xff]  ;;  %v3401_v9 = vld [vmem:[#allocation3 + $0x28] sm:$0xff]  ;;  %3102 = vset.pattern.permute.xlu0 %v3201_v23  ;;  %s3204_s23 = smov 35   ;;  %s3205_s29 = smov 21   ;;  %vm1072_vm3 = vcmask 121860  }
  0x28   : > { %s2751_s22 = sshll.u32 %s3361_s21, 3  ;;  %v3407_v10 = vld [vmem:[#allocation3 + $0x60] sm:$0xff]  ;;  %v3415_v12 = vld [vmem:[#allocation3 + $0x58] sm:$0xff]  ;;  %v3423_v14 = vld [vmem:[#allocation3 + $0x50] sm:$0xff]  ;;  %s3202_s21 = smov 31   ;;  %vm1040_vm4 = vcmask 285852  }
  0x29   : > { %s303_s8 = scalar_lea.vmem %s3703_s0, %s2751_s22  ;;  %v3409_v11 = vld [vmem:[#allocation3 + $0x20] sm:$0xff]  ;;  %v3417_v13 = vld [vmem:[#allocation3 + $0x18] sm:$0xff]  ;;  %v3425_v15 = vld [vmem:[#allocation3 + $0x10] sm:$0xff]  ;;  %s308_s18 = scalar_lea.vmem %s3704_s1, %s2751_s22  ;;  %vm1077_vm5 = vcmask 269452   ;;  %vm311_vm6 = vcmask 703488   ;;  %vm1082_vm7 = vcmask 417052  }
  0x2a   : > { %v3373_v1 = vld [vmem:[%s303_s8] sm:$0xff]  ;;  %v3454_v19 = vld [vmem:[#allocation3 + $0x40] sm:$0xff]  ;;  %s3203_s22 = smov 19   ;;  %s3206_s8 = smov 33   ;;  %v2759_v28 = vld [vmem:[%s3705_s2 + $0x8] sm:$0xf] }
  0x2b   : > { %2861 = vmatpush3.msra.mxu0 %v3373_v1  ;;  %2866 = vmatpush3.msra.mxu1 %v3373_v1  ;;  %v3431_v16 = vld [vmem:[#allocation3 + $0x48] sm:$0xff]  ;;  %v3456_v20 = vld [vmem:[#allocation3] sm:$0xff]  ;;  %s3207_s9 = smov 23   ;;  %s3208_s13 = smov 37   ;;  %v2761_v29 = vld [vmem:[%s3705_s2 + $0xc] sm:$0xf] }
  0x2c   : > { %2863 = vmatmul.mubr.msk.f32.vlgmr.msra.gmra.mxu0 %vm316_vm1, %v315_v2  ;;  %2868 = vmatmul.mubr.msk.f32.vlgmr.msra.gmra.mxu1 %vm316_vm1, %v2755_v3  ;;  %v3433_v17 = vld [vmem:[#allocation3 + $0x8] sm:$0xff]  ;;  %s3209_s14 = smov 25   ;;  %s3210_s15 = smov 39   ;;  %312 = vst.msk [vmem:[#allocation2 + $0x10] sm:$0xff] %vm311_vm6, %v3199_v0  ;;  %vm1045_vm8 = vcmask 433452   ;;  %vm1087_vm9 = vcmask 564652  }
  0x2d   : > { %2870 = vmatprep.subr.mxu0 %v3199_v0  ;;  %2889 = vmatprep.subr.mxu1 %v3199_v0  ;;  %v3452_v18 = vld [vmem:[%s308_s18] sm:$0xff]  ;;  %s3211_s16 = smov 45   ;;  %s3212_s17 = smov 41   ;;  %vm1050_vm10 = vcmask 581052   ;;  %vm1092_vm11 = vcmask 712252   ;;  %vm1055_vm12 = vcmask 728652  }
  0x2e   : > { %2871 = vmatpush3.msra.mxu0 %v3383_v4  ;;  %2890 = vmatpush3.msra.mxu1 %v3385_v5  ;;  %v3464_v21 = vcombine.low %v3452_v18, %v3452_v18  ;;  %v314_v22 = vld [vmem:[%s3706_s3] sm:$0xf]  ;;  %s3213_s18 = smov 27   ;;  %s3214_s19 = smov 43   ;;  %vm1097_vm13 = vcmask 859852   ;;  %vm1109_vm14 = vcmask 105476  }
  0x2f   : > { %2872 = vmatprep.subr.mxu0 %v3199_v0  ;;  %2891 = vmatprep.subr.mxu1 %v3199_v0  ;;  %vm1102_vm15 = vcmask 1007452   ;;  %vm1065_vm6 = vcmask 1023852   ;;  %s3221_s20 = smov 59   ;;  %v1124_v23 = vld [vmem:[%s3707_s4] sm:$0xf] }
  0x30   : > { %2873 = vmatpush3.msra.mxu0 %v3391_v6  ;;  %2892 = vmatpush3.msra.mxu1 %v3393_v7 }
  0x31   : > { %2874 = vmatprep.subr.mxu0 %v3199_v0  ;;  %2893 = vmatprep.subr.mxu1 %v3199_v0 }
  0x32   : > { %2875 = vmatpush3.msra.mxu0 %v3399_v8  ;;  %2894 = vmatpush3.msra.mxu1 %v3401_v9 }
  0x33   : > { %2876 = vmatprep.subr.mxu0 %v3199_v0  ;;  %2895 = vmatprep.subr.mxu1 %v3199_v0 }
  0x34   : > { %2877 = vmatpush3.msra.mxu0 %v3407_v10  ;;  %2896 = vmatpush3.msra.mxu1 %v3409_v11 }
  0x35   : > { %2878 = vmatprep.subr.mxu0 %v3199_v0  ;;  %2897 = vmatprep.subr.mxu1 %v3199_v0 }
  0x36   : > { %2879 = vmatpush3.msra.mxu0 %v3415_v12  ;;  %2898 = vmatpush3.msra.mxu1 %v3417_v13 }
  0x37   : > { %2880 = vmatprep.subr.mxu0 %v3199_v0  ;;  %2899 = vmatprep.subr.mxu1 %v3199_v0 }
  0x38   : > { %2881 = vmatpush3.msra.mxu0 %v3423_v14  ;;  %2900 = vmatpush3.msra.mxu1 %v3425_v15 }
  0x39   : > { %2882 = vmatprep.subr.mxu0 %v3199_v0  ;;  %2901 = vmatprep.subr.mxu1 %v3199_v0 }
  0x3a   : > { %2883 = vmatpush3.msra.mxu0 %v3431_v16  ;;  %2902 = vmatpush3.msra.mxu1 %v3433_v17 }
  0x3b   : > { %2884 = vmatprep.subr.mxu0 %v3199_v0  ;;  %2903 = vmatprep.subr.mxu1 %v3199_v0 }
  0x3c   : > { %2886 = vmatprep.mubr.msk.f32.mxu0 %vm3200_vm0, %v3199_v0  ;;  %2905 = vmatprep.mubr.msk.f32.mxu1 %vm3200_vm0, %v3199_v0 }
  0x3d   : > { %2885 = vmatpush3.msra.mxu0 %v3454_v19  ;;  %2904 = vmatpush3.msra.mxu1 %v3456_v20 }
  0x3e   : > { %2908 = vmatprep.subr.mxu0 %v3199_v0  ;;  %2913 = vmatprep.subr.mxu1 %v3199_v0 }
  0x3f   : > { %1067 = vrot.lane.b32.xlu1 %v3464_v21, %s3202_s21  ;;  %631 = vperm.xlu0 %3102, %v314_v22  }
  0x43   : > { %1037 = vrot.lane.b32.xlu1 %v3464_v21, %s3203_s22  ;;  %1079 = vrot.lane.b32.xlu0 %v3452_v18, %s3204_s23  ;;  %s3225_s23 = smov 117  }
  0x47   : > { %1042 = vrot.lane.b32.xlu1 %v3464_v21, %s3205_s29  ;;  %1074 = vrot.lane.b32.xlu0 %v3464_v21, %s3206_s8  ;;  %s3226_s29 = smov 57   ;;  %s3227_s8 = smov 77  }
  0x4b   : > { %1047 = vrot.lane.b32.xlu1 %v3464_v21, %s3207_s9  ;;  %1084 = vrot.lane.b32.xlu0 %v3452_v18, %s3208_s13  ;;  %s3215_s9 = smov 47  }
  0x4f   : > { %1052 = vrot.lane.b32.xlu1 %v3464_v21, %s3209_s14  ;;  %1089 = vrot.lane.b32.xlu0 %v3452_v18, %s3210_s15  ;;  %s3216_s14 = smov 29  }
  0x53   : > { %1104 = vrot.lane.b32.xlu1 %v3452_v18, %s3211_s16  ;;  %1094 = vrot.lane.b32.xlu0 %v3452_v18, %s3212_s17  ;;  %s3217_s16 = smov 99   ;;  %s3218_s17 = smov 79  }
  0x57   : > { %1057 = vrot.lane.b32.xlu1 %v3464_v21, %s3213_s18  ;;  %1099 = vrot.lane.b32.xlu0 %v3452_v18, %s3214_s19  ;;  %s3219_s18 = smov 119   ;;  %s3220_s19 = smov 11  }
  0x5b   : > { %1111 = vrot.lane.b32.xlu1 %v3452_v18, %s3215_s9  ;;  %1062 = vrot.lane.b32.xlu0 %v3464_v21, %s3216_s14  ;;  %s3229_s9 = smov 127  }
  0xb1   : > { %v1068_v31 = vpop.permute.xlu1 %1067 }
  0xb2   : > { %1073 = vst.msk [vmem:[#allocation2 + $0x8] sm:$0xf0] %vm1072_vm3, %v1068_v31  ;;  %vm1107_vm3 = vcmask 1048556  }
  0xb5   : > { %v1038_v33 = vpop.permute.xlu1 %1037 }
  0xb6   : > { %1041 = vst.msk [vmem:[#allocation2] sm:$0xf0] %vm1040_vm4, %v1038_v33  ;;  %vm1060_vm4 = vcmask 876252  }
  0xb9   : > { %v1043_v35 = vpop.permute.xlu1 %1042 }
  0xba   : > { %v3542_v30 = vpop.permute.xlu0 %631  ;;  %1046 = vst.msk [vmem:[#allocation2] sm:$0xf0] %vm1045_vm8, %v1043_v35  ;;  %vm656_vm8 = vcmask 117760  }
  0xbd   : > { %v1048_v37 = vpop.permute.xlu1 %1047 }
  0xbe   : > { %v1080_v32 = vpop.permute.xlu0 %1079  ;;  %1051 = vst.msk [vmem:[#allocation2] sm:$0xf0] %vm1050_vm10, %v1048_v37  ;;  %vm639_vm10 = vcmask 281752  }
  0xc1   : > { %v1053_v39 = vpop.permute.xlu1 %1052 }
  0xc2   : > { %v1075_v34 = vpop.permute.xlu0 %1074  ;;  %1056 = vst.msk [vmem:[#allocation2] sm:$0xf0] %vm1055_vm12, %v1053_v39  ;;  %vm644_vm12 = vcmask 576952  }
  0xc3   : > { %1078 = vst.msk [vmem:[#allocation2 + $0x8] sm:$0xf0] %vm1077_vm5, %v1075_v34  ;;  %vm1114_vm5 = vcmask 253052  }
  0xc4   : > { %1083 = vst.msk [vmem:[#allocation2 + $0x8] sm:$0xf0] %vm1082_vm7, %v1080_v32  ;;  %vm1070_vm7 = vcmask 1048572  }
  0xc5   : > { %v1105_v41 = vpop.permute.xlu1 %1104 }
  0xc6   : > { %v1085_v36 = vpop.permute.xlu0 %1084  ;;  %1110 = vst.msk [vmem:[#allocation2 + $0x10] sm:$0xf0] %vm1109_vm14, %v1105_v41  ;;  %vm649_vm14 = vcmask 872152  }
  0xc7   : > { %1088 = vst.msk [vmem:[#allocation2 + $0x8] sm:$0xf0] %vm1087_vm9, %v1085_v36  ;;  %vm661_vm9 = vcmask 412952   ;;  %v2776_v36 = vld [vmem:[%s3707_s4 + $0x10] sm:$0xf] }
  0xc9   : > { %v1058_v43 = vpop.permute.xlu1 %1057 }
  0xca   : > { %v1090_v38 = vpop.permute.xlu0 %1089  ;;  %1061 = vst.msk [vmem:[#allocation2] sm:$0xf0] %vm1060_vm4, %v1058_v43  ;;  %vm1010_vm4 = vcmask 265352  }
  0xcb   : > { %1093 = vst.msk [vmem:[#allocation2 + $0x8] sm:$0xf0] %vm1092_vm11, %v1090_v38  ;;  %vm666_vm11 = vcmask 708152  }
  0xcd   : > { %v1112_v44 = vpop.permute.xlu1 %1111 }
  0xce   : > { %v1095_v40 = vpop.permute.xlu0 %1094  ;;  %1115 = vst.msk [vmem:[#allocation2 + $0x10] sm:$0xf0] %vm1114_vm5, %v1112_v44  ;;  %vm1015_vm5 = vcmask 560552  }
  0xcf   : > { %1098 = vst.msk [vmem:[#allocation2 + $0x8] sm:$0xf0] %vm1097_vm13, %v1095_v40  ;;  %vm671_vm13 = vcmask 1003352  }
  0xd2   : > { %v1100_v42 = vpop.permute.xlu0 %1099 }
  0xd3   : > { %1103 = vst.msk [vmem:[#allocation2 + $0x8] sm:$0xf0] %vm1102_vm15, %v1100_v42  ;;  %vm654_vm15 = vcmask 1044472  }
  0xd4   : > { %1108 = vst.msk [vmem:[#allocation2 + $0x8] sm:$0xf0] %vm1107_vm3, %v1105_v41  ;;  %vm676_vm3 = vcmask 248952   ;;  %v2779_v41 = vld [vmem:[%s3707_s4 + $0x14] sm:$0xf] }
  0xd6   : > { %v1063_v45 = vpop.permute.xlu0 %1062 }
  0xd7   : > { %1066 = vst.msk [vmem:[#allocation2] sm:$0xf0] %vm1065_vm6, %v1063_v45  ;;  %vm1020_vm6 = vcmask 855752  }
  0xd8   : > { %1071 = vst.msk [vmem:[#allocation2] sm:$0xf0] %vm1070_vm7, %v1068_v31  ;;  %vm995_vm7 = vcmask 429352  }
  0xec   : > { %v386_v24 = vpop.f32.mrf.mxu0  ;;  %v461_v25 = vpop.f32.mrf.mxu1 }
  0xed   : > { %2887 = vmatmul.mubr.msk.f32.vlgmr.msra.gmra.mxu0 %vm482_vm2, %v461_v25  ;;  %2906 = vmatmul.mubr.msk.f32.vlgmr.msra.gmra.mxu1 %vm482_vm2, %v386_v24 }
  0xee   : > { %v2864_v26 = vpop.f32.mrf.mxu0  ;;  %v2869_v27 = vpop.f32.mrf.mxu1  ;;  %2909 = vmatpush3.msra.mxu0 %v3373_v1  ;;  %2910 = vmatprep.mubr.msk.f32.mxu0 %vm3200_vm0, %v3199_v0 }
  0xef   : > { %2914 = vmatpush3.msra.mxu1 %v3373_v1  ;;  %2915 = vmatprep.mubr.msk.f32.mxu1 %vm3200_vm0, %v3199_v0  ;;  %v2770_v26 = vld [vmem:[%s3707_s4 + $0x8] sm:$0xf] }
  0xf0   : > { %2918 = vmatprep.subr.mxu0 %v3199_v0  ;;  %2937 = vmatprep.subr.mxu1 %v3199_v0 }
  0xf1   : > { %2911 = vmatmul.mubr.msk.f32.vlgmr.msra.gmra.mxu0 %vm316_vm1, %v2759_v28  ;;  %2916 = vmatmul.mubr.msk.f32.vlgmr.msra.gmra.mxu1 %vm316_vm1, %v2761_v29  ;;  %v2773_v29 = vld [vmem:[%s3707_s4 + $0xc] sm:$0xf] }
  0xf2   : > { %2919 = vmatpush3.msra.mxu0 %v3383_v4  ;;  %2938 = vmatpush3.msra.mxu1 %v3385_v5 }
  0xf3   : > { %2920 = vmatprep.subr.mxu0 %v3199_v0  ;;  %2939 = vmatprep.subr.mxu1 %v3199_v0 }
  0xf4   : > { %2921 = vmatpush3.msra.mxu0 %v3391_v6  ;;  %2940 = vmatpush3.msra.mxu1 %v3393_v7 }
  0xf5   : > { %2922 = vmatprep.subr.mxu0 %v3199_v0  ;;  %2941 = vmatprep.subr.mxu1 %v3199_v0 }
  0xf6   : > { %2923 = vmatpush3.msra.mxu0 %v3399_v8  ;;  %2942 = vmatpush3.msra.mxu1 %v3401_v9 }
  0xf7   : > { %2924 = vmatprep.subr.mxu0 %v3199_v0  ;;  %2943 = vmatprep.subr.mxu1 %v3199_v0 }
  0xf8   : > { %2925 = vmatpush3.msra.mxu0 %v3407_v10  ;;  %2944 = vmatpush3.msra.mxu1 %v3409_v11 }
  0xf9   : > { %2926 = vmatprep.subr.mxu0 %v3199_v0  ;;  %2945 = vmatprep.subr.mxu1 %v3199_v0 }
  0xfa   : > { %2927 = vmatpush3.msra.mxu0 %v3415_v12  ;;  %2946 = vmatpush3.msra.mxu1 %v3417_v13 }
  0xfb   : > { %2928 = vmatprep.subr.mxu0 %v3199_v0  ;;  %2947 = vmatprep.subr.mxu1 %v3199_v0 }
  0xfc   : > { %2929 = vmatpush3.msra.mxu0 %v3423_v14  ;;  %2948 = vmatpush3.msra.mxu1 %v3425_v15 }
  0xfd   : > { %2930 = vmatprep.subr.mxu0 %v3199_v0  ;;  %2949 = vmatprep.subr.mxu1 %v3199_v0 }
  0xfe   : > { %2931 = vmatpush3.msra.mxu0 %v3431_v16  ;;  %2950 = vmatpush3.msra.mxu1 %v3433_v17 }
  0xff   : > { %2932 = vmatprep.subr.mxu0 %v3199_v0  ;;  %2951 = vmatprep.subr.mxu1 %v3199_v0 }
 0x100   : > { %2933 = vmatpush3.msra.mxu0 %v3454_v19  ;;  %2934 = vmatprep.mubr.msk.f32.mxu0 %vm3200_vm0, %v3199_v0  ;;  %v2633_v19 = vld [vmem:[%s3708_s5] sm:$0xf] }
 0x101   : > { %2952 = vmatpush3.msra.mxu1 %v3456_v20  ;;  %2953 = vmatprep.mubr.msk.f32.mxu1 %vm3200_vm0, %v3199_v0  ;;  %v2765_v20 = vld [vmem:[%s3707_s4 + $0x4] sm:$0xf] }
 0x102   : > { %2956 = vmatprep.subr.mxu1 %v3199_v0 }
 0x1ad   : > { %v552_v46 = vpop.f32.mrf.mxu0  ;;  %v625_v47 = vpop.f32.mrf.mxu1 }
 0x1ae   : > { %v626_v48 = vadd.f32 %v625_v47, %v552_v46 }
 0x1af   : > { %v2888_v49 = vpop.f32.mrf.mxu0  ;;  %v2907_v50 = vpop.f32.mrf.mxu1 }
 0x1b0   : > { %v634_v51 = vadd.f32 %v3542_v30, %v626_v48  ;;  %v2782_v48 = vld [vmem:[%s3707_s4 + $0x18] sm:$0xf] }
 0x1b1   : > { %v749_v52 = vpop.f32.mrf.mxu0  ;;  %v824_v53 = vpop.f32.mrf.mxu1 }
 0x1b2   : > { %2935 = vmatmul.mubr.msk.f32.vlgmr.msra.gmra.mxu0 %vm482_vm2, %v824_v53  ;;  %658 = vrot.lane.b32.xlu1 %v634_v51, %s3217_s16  ;;  %s3231_s16 = smov 109   ;;  %v2785_v53 = vld [vmem:[%s3707_s4 + $0x1c] sm:$0xf] }
 0x1b3   : > { %651 = vrot.lane.b32.xlu0 %v634_v51, %s3218_s17  ;;  %2954 = vmatmul.mubr.msk.f32.vlgmr.msra.gmra.mxu1 %vm482_vm2, %v749_v52  ;;  %v2912_v54 = vpop.f32.mrf.mxu0  ;;  %v2917_v55 = vpop.f32.mrf.mxu1  ;;  %s3232_s17 = smov 108  }
 0x1b4   : > { %2958 = vmatprep.mubr.msk.f32.mxu1 %vm3200_vm0, %v3199_v0  ;;  %1209 = vmatprep.mubr.f32.mxu0 %v3199_v0 }
 0x1b6   : > { %636 = vrot.lane.b32.xlu1 %v634_v51, %s3203_s22  ;;  %s3223_s22 = smov 97  }
 0x1b7   : > { %663 = vrot.lane.b32.xlu0 %v634_v51, %s3219_s18  ;;  %s3233_s18 = smov 92  }
 0x1ba   : > { %641 = vrot.lane.b32.xlu1 %v634_v51, %s3210_s15  ;;  %s3224_s15 = smov 49  }
 0x1bb   : > { %668 = vrot.lane.b32.xlu0 %v634_v51, %s3220_s19  ;;  %s3234_s19 = smov 91  }
 0x1be   : > { %646 = vrot.lane.b32.xlu1 %v634_v51, %s3221_s20  ;;  %s3235_s20 = smov 90  }
 0x1c2   : > { %673 = vrot.lane.b32.xlu1 %v634_v51, %s3202_s21  ;;  %s3222_s21 = smov 9  }
 0x224   : > { %v659_v56 = vpop.permute.xlu1 %658 }
 0x225   : > { %v652_v57 = vpop.permute.xlu0 %651 }
 0x226   : > { %657 = vst.msk [vmem:[#allocation2 + $0x8] sm:$0xf] %vm656_vm8, %v652_v57  ;;  %vm1119_vm8 = vcmask 400652  }
 0x227   : > { %662 = vst.msk [vmem:[#allocation2 + $0x8] sm:$0xf] %vm661_vm9, %v659_v56  ;;  %vm1025_vm9 = vcmask 1044456  }
 0x228   : > { %v637_v58 = vpop.permute.xlu1 %636 }
 0x229   : > { %640 = vst.msk [vmem:[#allocation2] sm:$0xf] %vm639_vm10, %v637_v58  ;;  %v664_v59 = vpop.permute.xlu0 %663  ;;  %vm1027_vm10 = vcmask 101376  }
 0x22a   : > { %667 = vst.msk [vmem:[#allocation2 + $0x8] sm:$0xf] %vm666_vm11, %v664_v59  ;;  %vm1032_vm11 = vcmask 396552  }
 0x22c   : > { %v642_v60 = vpop.permute.xlu1 %641 }
 0x22d   : > { %645 = vst.msk [vmem:[#allocation2] sm:$0xf] %vm644_vm12, %v642_v60  ;;  %v669_v61 = vpop.permute.xlu0 %668  ;;  %vm1000_vm12 = vcmask 724552  }
 0x22e   : > { %672 = vst.msk [vmem:[#allocation2 + $0x8] sm:$0xf] %vm671_vm13, %v669_v61  ;;  %vm1005_vm13 = vcmask 1019752  }
 0x230   : > { %v647_v62 = vpop.permute.xlu1 %646 }
 0x231   : > { %650 = vst.msk [vmem:[#allocation2] sm:$0xf] %vm649_vm14, %v647_v62  ;;  %vm1136_vm14 = vcmask 1039360  }
 0x232   : > { %655 = vst.msk [vmem:[#allocation2] sm:$0xf] %vm654_vm15, %v652_v57  ;;  %vm1438_vm15 = vcmask 1031168  }
 0x234   : > { %v674_v63 = vpop.permute.xlu1 %673 }
 0x235   : > { %677 = vst.msk [vmem:[#allocation2 + $0x10] sm:$0xf] %vm676_vm3, %v674_v63  ;;  %vm1599_vm3 = vcmask 900096  }
 0x272   : > { %v913_v1 = vpop.f32.mrf.mxu0 }
 0x273   : > { %v986_v2 = vpop.f32.mrf.mxu1 }
 0x274   : > { %v987_v3 = vadd.f32 %v986_v2, %v913_v1  ;;  %v2936_v4 = vpop.f32.mrf.mxu0  ;;  %v2788_v2 = vld [vmem:[%s3707_s4 + $0x20] sm:$0xf] }
 0x275   : > { %v2955_v5 = vpop.f32.mrf.mxu1 }
 0x276   : > { %v990_v6 = vadd.f32 %v987_v3, %v3542_v30 }
 0x278   : > { %1017 = vrot.lane.b32.xlu1 %v990_v6, %s3222_s21  ;;  %1007 = vrot.lane.b32.xlu0 %v990_v6, %s3223_s22  ;;  %s3238_s21 = smov 120   ;;  %s3239_s22 = smov 122  }
 0x27c   : > { %1029 = vrot.lane.b32.xlu1 %v990_v6, %s3224_s15  ;;  %1012 = vrot.lane.b32.xlu0 %v990_v6, %s3225_s23  ;;  %s3241_s23 = smov 114  }
 0x280   : > { %992 = vrot.lane.b32.xlu0 %v990_v6, %s3208_s13  ;;  %1116 = vrot.lane.b32.xlu1 %v3452_v18, %s3224_s15  ;;  %s3228_s13 = smov 126   ;;  %s3240_s15 = smov 118  }
 0x284   : > { %1022 = vrot.lane.b32.xlu0 %v990_v6, %s3216_s14  ;;  %s3230_s14 = smov 110  }
 0x288   : > { %997 = vrot.lane.b32.xlu0 %v990_v6, %s3226_s29  ;;  %s3242_s29 = smov 116  }
 0x28c   : > { %1002 = vrot.lane.b32.xlu0 %v990_v6, %s3227_s8  ;;  %s3244_s8 = smov 104  }
 0x2ea   : > { %v1018_v7 = vpop.permute.xlu1 %1017  ;;  %v1008_v8 = vpop.permute.xlu0 %1007 }
 0x2eb   : > { %1011 = vst.msk [vmem:[#allocation2 + $0x8] sm:$0xf] %vm1010_vm4, %v1008_v8  ;;  %vm1760_vm4 = vcmask 891904  }
 0x2ee   : > { %v1030_v9 = vpop.permute.xlu1 %1029  ;;  %v1013_v10 = vpop.permute.xlu0 %1012 }
 0x2ef   : > { %1016 = vst.msk [vmem:[#allocation2 + $0x8] sm:$0xf] %vm1015_vm5, %v1013_v10  ;;  %vm1921_vm5 = vcmask 883712  }
 0x2f0   : > { %1021 = vst.msk [vmem:[#allocation2 + $0x8] sm:$0xf] %vm1020_vm6, %v1018_v7  ;;  %vm2082_vm6 = vcmask 752640  }
 0x2f2   : > { %v993_v11 = vpop.permute.xlu0 %992  ;;  %v1117_v12 = vpop.permute.xlu1 %1116 }
 0x2f3   : > { %996 = vst.msk [vmem:[#allocation2] sm:$0xf] %vm995_vm7, %v993_v11  ;;  %vm2243_vm7 = vcmask 744448  }
 0x2f4   : > { %1120 = vst.msk [vmem:[#allocation2 + $0x10] sm:$0xf0] %vm1119_vm8, %v1117_v12  ;;  %vm2404_vm8 = vcmask 736256  }
 0x2f6   : > { %v1023_v13 = vpop.permute.xlu0 %1022 }
 0x2f7   : > { %1026 = vst.msk [vmem:[#allocation2 + $0x8] sm:$0xf] %vm1025_vm9, %v1023_v13  ;;  %vm2617_vm9 = vcmask 392192  }
 0x2f8   : > { %1028 = vst.msk [vmem:[#allocation2 + $0x10] sm:$0xf] %vm1027_vm10, %v1023_v13  ;;  %vm2607_vm10 = vcmask 818176  }
 0x2f9   : > { %1033 = vst.msk [vmem:[#allocation2 + $0x10] sm:$0xf] %vm1032_vm11, %v1030_v9  ;;  %vm2620_vm11 = vcmask 654336  }
 0x2fa   : > { %v998_v14 = vpop.permute.xlu0 %997 }
 0x2fb   : > { %1001 = vst.msk [vmem:[#allocation2] sm:$0xf] %vm1000_vm12, %v998_v14  ;;  %vm2622_vm12 = vcmask 785408  }
 0x2fe   : > { %v1003_v15 = vpop.permute.xlu0 %1002  ;;  %v1122_v18 = vld [vmem:[#allocation2 + $0x8] sm:$0xff] }
 0x2ff   : > { %1006 = vst.msk [vmem:[#allocation2] sm:$0xf] %vm1005_vm13, %v1003_v15  ;;  %vm2624_vm13 = vcmask 916480  }
 0x300   : > { %v1123_v16 = vld [vmem:[#allocation2 + $0x10] sm:$0xff] }
 0x301   : > { %1436 = vrot.lane.b32.xlu1 %v1123_v16, %s3228_s13  ;;  %1134 = vrot.lane.b32.xlu0 %v1123_v16, %s3229_s9 }
 0x305   : > { %1597 = vrot.lane.b32.xlu0 %v1123_v16, %s3230_s14 }
 0x306   : > { %v3560_v17 = vld [vmem:[#allocation2] sm:$0xff] }
 0x307   : > { %1130 = vrot.lane.b32.xlu1 %v3560_v17, %s3229_s9 }
 0x309   : > { %1432 = vrot.lane.b32.xlu0 %v3560_v17, %s3228_s13 }
 0x30b   : > { %1593 = vrot.lane.b32.xlu1 %v3560_v17, %s3230_s14 }
 0x30d   : > { %1754 = vrot.lane.b32.xlu0 %v3560_v17, %s3231_s16 }
 0x30f   : > { %1132 = vrot.lane.b32.xlu1 %v1122_v18, %s3229_s9  ;;  %s3245_s9 = smov 102  }
 0x311   : > { %1434 = vrot.lane.b32.xlu0 %v1122_v18, %s3228_s13 }
 0x313   : > { %1758 = vrot.lane.b32.xlu1 %v1123_v16, %s3231_s16 }
 0x315   : > { %1919 = vrot.lane.b32.xlu0 %v1123_v16, %s3232_s17 }
 0x317   : > { %1915 = vrot.lane.b32.xlu1 %v3560_v17, %s3232_s17 }
 0x319   : > { %1756 = vrot.lane.b32.xlu0 %v1122_v18, %s3231_s16  ;;  %s3246_s16 = smov 106  }
 0x31b   : > { %1595 = vrot.lane.b32.xlu1 %v1122_v18, %s3230_s14 }
 0x31d   : > { %2076 = vrot.lane.b32.xlu0 %v3560_v17, %s3233_s18 }
 0x31f   : > { %2080 = vrot.lane.b32.xlu1 %v1123_v16, %s3233_s18 }
 0x321   : > { %2078 = vrot.lane.b32.xlu0 %v1122_v18, %s3233_s18  ;;  %s3247_s18 = smov 98  }
 0x323   : > { %1917 = vrot.lane.b32.xlu1 %v1122_v18, %s3232_s17 }
 0x325   : > { %2241 = vrot.lane.b32.xlu0 %v1123_v16, %s3234_s19 }
 0x327   : > { %2237 = vrot.lane.b32.xlu1 %v3560_v17, %s3234_s19 }
 0x329   : > { %2400 = vrot.lane.b32.xlu0 %v1122_v18, %s3235_s20 }
 0x32b   : > { %2239 = vrot.lane.b32.xlu1 %v1122_v18, %s3234_s19  ;;  %s3236_s19 = smov 100  }
 0x32d   : > { %2398 = vrot.lane.b32.xlu0 %v3560_v17, %s3235_s20 }
 0x32f   : > { %2402 = vrot.lane.b32.xlu1 %v1123_v16, %s3235_s20  ;;  %s3237_s20 = smov 124  }
 0x331   : > { %2636 = vperm.xlu0 %3102, %v2633_v19  }
 0x373   : > { %v1135_v21 = vpop.permute.xlu0 %1134  ;;  %v1437_v22 = vpop.permute.xlu1 %1436 }
 0x374   : > { %2957 = vmatpush3.msra.mxu1 %v1135_v21 }
 0x375   : > { %2959 = vmatmul.mubr.msk.f32.vlgmr.msra.gmra.mxu1 %vm316_vm1, %v2765_v20  ;;  %2961 = vmatprep.subr.mxu1 %v3199_v0 }
 0x376   : > { %2962 = vmatpush3.msra.mxu1 %v1123_v16  ;;  %2963 = vmatprep.mubr.msk.f32.mxu1 %vm3200_vm0, %v3199_v0 }
 0x377   : > { %v1598_v24 = vpop.permute.xlu0 %1597  ;;  %2966 = vmatprep.subr.mxu1 %v3199_v0 }
 0x379   : > { %2964 = vmatmul.mubr.msk.f32.vlgmr.msra.gmra.mxu1 %vm316_vm1, %v1124_v23  ;;  %v1131_v25 = vpop.permute.xlu1 %1130 }
 0x37a   : > { %2967 = vmatpush3.msra.mxu1 %v1437_v22  ;;  %2968 = vmatprep.mubr.msk.f32.mxu1 %vm3200_vm0, %v3199_v0 }
 0x37b   : > { %v1433_v27 = vpop.permute.xlu0 %1432  ;;  %2971 = vmatprep.subr.mxu1 %v3199_v0 }
 0x37d   : > { %2969 = vmatmul.mubr.msk.f32.vlgmr.msra.gmra.mxu1 %vm316_vm1, %v2770_v26  ;;  %v1594_v28 = vpop.permute.xlu1 %1593 }
 0x37e   : > { %2972 = vmatpush3.msra.mxu1 %v1598_v24  ;;  %2973 = vmatprep.mubr.msk.f32.mxu1 %vm3200_vm0, %v3199_v0 }
 0x37f   : > { %v1755_v30 = vpop.permute.xlu0 %1754  ;;  %2976 = vmatprep.subr.mxu1 %v3199_v0 }
 0x381   : > { %2974 = vmatmul.mubr.msk.f32.vlgmr.msra.gmra.mxu1 %vm316_vm1, %v2773_v29  ;;  %v1133_v31 = vpop.permute.xlu1 %1132 }
 0x382   : > { %2978 = vmatprep.mubr.msk.f32.mxu1 %vm3200_vm0, %v3199_v0  ;;  %v1137_v32 = vsel %vm1136_vm14, %v1131_v25, %v1133_v31  ;;  %v1138_v34 = vsel %vm1136_vm14, %v1133_v31, %v1135_v21  ;;  %vm2581_vm14 = vcmask 932864  }
 0x383   : > { %v1435_v33 = vpop.permute.xlu0 %1434  ;;  %1175 = vmatprep.subr.mxu0 %v1138_v34 }
 0x384   : > { %1176 = vmatpush1.msra.mxu0 %v1137_v32  ;;  %v1440_v38 = vsel %vm1438_vm15, %v1435_v33, %v1437_v22  ;;  %v1439_v39 = vsel %vm1438_vm15, %v1433_v27, %v1435_v33 }
 0x385   : > { %2766 = vmatmul.mubr.msk.f32.vlgmr.msra.gmra.mxu0 %vm316_vm1, %v2765_v20  ;;  %1319 = vmatprep.subr.mxu0 %v1122_v18  ;;  %v1759_v35 = vpop.permute.xlu1 %1758 }
 0x386   : > { %1320 = vmatpush1.msra.mxu0 %v3560_v17  ;;  %2977 = vmatpush3.msra.mxu1 %v1759_v35 }
 0x387   : > { %v1920_v37 = vpop.permute.xlu0 %1919  ;;  %1477 = vmatprep.subr.mxu0 %v1440_v38  ;;  %2981 = vmatprep.subr.mxu1 %v3199_v0 }
 0x388   : > { %1353 = vmatprep.mubr.f32.mxu0 %v3199_v0  ;;  %2979 = vmatmul.mubr.msk.f32.vlgmr.msra.gmra.mxu1 %vm316_vm1, %v2776_v36 }
 0x389   : > { %2982 = vmatpush3.msra.mxu1 %v1920_v37  ;;  %2768 = vmatmul.mubr.msk.f32.vlgmr.msra.gmra.mxu0 %vm316_vm1, %v1124_v23  ;;  %v1916_v40 = vpop.permute.xlu1 %1915 }
 0x38a   : > { %1478 = vmatpush1.msra.mxu0 %v1439_v39  ;;  %1511 = vmatprep.mubr.f32.mxu0 %v3199_v0 }
 0x38b   : > { %v1757_v42 = vpop.permute.xlu0 %1756  ;;  %2983 = vmatprep.mubr.msk.f32.mxu1 %vm3200_vm0, %v3199_v0  ;;  %2986 = vmatprep.subr.mxu1 %v3199_v0 }
 0x38c   : > { %2984 = vmatmul.mubr.msk.f32.vlgmr.msra.gmra.mxu1 %vm316_vm1, %v2779_v41  ;;  %v1762_v47 = vsel %vm1760_vm4, %v1757_v42, %v1759_v35  ;;  %v1761_v49 = vsel %vm1760_vm4, %v1755_v30, %v1757_v42 }
 0x38d   : > { %2771 = vmatmul.mubr.msk.f32.vlgmr.msra.gmra.mxu0 %vm316_vm1, %v2770_v26  ;;  %v1596_v43 = vpop.permute.xlu1 %1595  ;;  %2988 = vmatprep.mubr.msk.f32.mxu1 %vm3200_vm0, %v3199_v0 }
 0x38e   : > { %v1600_v44 = vsel %vm1599_vm3, %v1594_v28, %v1596_v43  ;;  %v1601_v46 = vsel %vm1599_vm3, %v1596_v43, %v1598_v24  ;;  %1672 = vmatprep.mubr.f32.mxu0 %v3199_v0 }
 0x38f   : > { %v2077_v45 = vpop.permute.xlu0 %2076  ;;  %1638 = vmatprep.subr.mxu0 %v1601_v46 }
 0x390   : > { %1639 = vmatpush1.msra.mxu0 %v1600_v44 }
 0x391   : > { %2774 = vmatmul.mubr.msk.f32.vlgmr.msra.gmra.mxu0 %vm316_vm1, %v2773_v29  ;;  %1799 = vmatprep.subr.mxu0 %v1762_v47  ;;  %v2081_v50 = vpop.permute.xlu1 %2080 }
 0x392   : > { %1800 = vmatpush1.msra.mxu0 %v1761_v49  ;;  %2987 = vmatpush3.msra.mxu1 %v2081_v50 }
 0x393   : > { %v2079_v51 = vpop.permute.xlu0 %2078  ;;  %1833 = vmatprep.mubr.f32.mxu0 %v3199_v0  ;;  %2989 = vmatmul.mubr.msk.f32.vlgmr.msra.gmra.mxu1 %vm316_vm1, %v2782_v48 }
 0x394   : > { %2991 = vmatprep.subr.mxu1 %v3199_v0  ;;  %2993 = vmatprep.mubr.msk.f32.mxu1 %vm3200_vm0, %v3199_v0  ;;  %v2084_v57 = vsel %vm2082_vm6, %v2079_v51, %v2081_v50  ;;  %v2083_v58 = vsel %vm2082_vm6, %v2077_v45, %v2079_v51 }
 0x395   : > { %2777 = vmatmul.mubr.msk.f32.vlgmr.msra.gmra.mxu0 %vm316_vm1, %v2776_v36  ;;  %v1918_v52 = vpop.permute.xlu1 %1917 }
 0x396   : > { %v1922_v54 = vsel %vm1921_vm5, %v1916_v40, %v1918_v52  ;;  %v1923_v56 = vsel %vm1921_vm5, %v1918_v52, %v1920_v37  ;;  %1994 = vmatprep.mubr.f32.mxu0 %v3199_v0 }
 0x397   : > { %v2242_v55 = vpop.permute.xlu0 %2241  ;;  %1960 = vmatprep.subr.mxu0 %v1923_v56 }
 0x398   : > { %2992 = vmatpush3.msra.mxu1 %v2242_v55  ;;  %1961 = vmatpush1.msra.mxu0 %v1922_v54 }
 0x399   : > { %2994 = vmatmul.mubr.msk.f32.vlgmr.msra.gmra.mxu1 %vm316_vm1, %v2785_v53  ;;  %2780 = vmatmul.mubr.msk.f32.vlgmr.msra.gmra.mxu0 %vm316_vm1, %v2779_v41  ;;  %v2238_v59 = vpop.permute.xlu1 %2237 }
 0x39a   : > { %2121 = vmatprep.subr.mxu0 %v2084_v57  ;;  %2155 = vmatprep.mubr.f32.mxu0 %v3199_v0 }
 0x39b   : > { %v2401_v60 = vpop.permute.xlu0 %2400  ;;  %2122 = vmatpush1.msra.mxu0 %v2083_v58  ;;  %2996 = vmatprep.subr.mxu1 %v3199_v0 }
 0x39c   : > { %2998 = vmatprep.mubr.msk.f32.mxu1 %vm3200_vm0, %v3199_v0  ;;  %vm2613_vm0 = vcmask 130048  }
 0x39d   : > { %2783 = vmatmul.mubr.msk.f32.vlgmr.msra.gmra.mxu0 %vm316_vm1, %v2782_v48  ;;  %v2240_v61 = vpop.permute.xlu1 %2239 }
 0x39e   : > { %v2244_v62 = vsel %vm2243_vm7, %v2238_v59, %v2240_v61  ;;  %v2245_v63 = vsel %vm2243_vm7, %v2240_v61, %v2242_v55  ;;  %2316 = vmatprep.mubr.f32.mxu0 %v3199_v0 }
 0x39f   : > { %2282 = vmatprep.subr.mxu0 %v2245_v63  ;;  %v2399_v1 = vpop.permute.xlu0 %2398 }
 0x3a0   : > { %2283 = vmatpush1.msra.mxu0 %v2244_v62  ;;  %v2405_v5 = vsel %vm2404_vm8, %v2399_v1, %v2401_v60 }
 0x3a1   : > { %2786 = vmatmul.mubr.msk.f32.vlgmr.msra.gmra.mxu0 %vm316_vm1, %v2785_v53  ;;  %v2403_v3 = vpop.permute.xlu1 %2402 }
 0x3a2   : > { %2997 = vmatpush3.msra.mxu1 %v2403_v3  ;;  %v2406_v4 = vsel %vm2404_vm8, %v2401_v60, %v2403_v3  ;;  %2477 = vmatprep.mubr.f32.mxu0 %v3199_v0 }
 0x3a3   : > { %2443 = vmatprep.subr.mxu0 %v2406_v4  ;;  %2999 = vmatmul.mubr.msk.f32.vlgmr.msra.gmra.mxu1 %vm316_vm1, %v2788_v2 }
 0x3a4   : > { %2444 = vmatpush1.msra.mxu0 %v2405_v5 }
 0x3a5   : > { %2789 = vmatmul.mubr.msk.f32.vlgmr.msra.gmra.mxu0 %vm316_vm1, %v2788_v2  ;;  %vm2615_vm1 = vcmask 261120  }
 0x3ac   : > { %v2637_v2 = vpop.permute.xlu0 %2636 }
 0x435   : > { %v1282_v6 = vpop.f32.mrf.mxu1 }
 0x437   : > { %v2960_v7 = vpop.f32.mrf.mxu1 }
 0x439   : > { %v1426_v8 = vpop.f32.mrf.mxu1 }
 0x43a   : > { %v1427_v19 = vadd.f32 %v1426_v8, %v1282_v6 }
 0x43b   : > { %v2965_v9 = vpop.f32.mrf.mxu1 }
 0x43d   : > { %v1584_v10 = vpop.f32.mrf.mxu1 }
 0x43e   : > { %v1590_v24 = vadd.f32 %v1584_v10, %v1427_v19 }
 0x43f   : > { %v2970_v11 = vpop.f32.mrf.mxu1 }
 0x441   : > { %v1745_v12 = vpop.f32.mrf.mxu1 }
 0x442   : > { %v1751_v28 = vadd.f32 %v1745_v12, %v1590_v24 }
 0x443   : > { %v2975_v13 = vpop.f32.mrf.mxu1 }
 0x445   : > { %v1211_v14 = vpop.f32.mrf.mxu0 }
 0x447   : > { %v1213_v15 = vpop.f32.mrf.mxu0 }
 0x448   : > { %v1906_v16 = vpop.f32.mrf.mxu1 }
 0x449   : > { %v1355_v17 = vpop.f32.mrf.mxu0  ;;  %v1912_v33 = vadd.f32 %v1906_v16, %v1751_v28 }
 0x44a   : > { %v2980_v0 = vpop.f32.mrf.mxu1  ;;  %v1356_v32 = vadd.f32 %v1355_v17, %v1211_v14 }
 0x44b   : > { %v1357_v18 = vpop.f32.mrf.mxu0 }
 0x44c   : > { %v2067_v20 = vpop.f32.mrf.mxu1  ;;  %v1358_v55 = vadd.f32 %v1357_v18, %v1213_v15 }
 0x44d   : > { %v1513_v21 = vpop.f32.mrf.mxu0  ;;  %v2073_v40 = vadd.f32 %v2067_v20, %v1912_v33 }
 0x44e   : > { %v2985_v22 = vpop.f32.mrf.mxu1  ;;  %v1588_v36 = vadd.f32 %v1513_v21, %v1356_v32 }
 0x44f   : > { %v1515_v23 = vpop.f32.mrf.mxu0 }
 0x450   : > { %v1589_v57 = vadd.f32 %v1515_v23, %v1358_v55 }
 0x451   : > { %v1674_v25 = vpop.f32.mrf.mxu0 }
 0x452   : > { %v1749_v39 = vadd.f32 %v1674_v25, %v1588_v36 }
 0x453   : > { %v1676_v26 = vpop.f32.mrf.mxu0  ;;  %v2228_v27 = vpop.f32.mrf.mxu1 }
 0x454   : > { %v2234_v44 = vadd.f32 %v2228_v27, %v2073_v40  ;;  %v1750_v58 = vadd.f32 %v1676_v26, %v1589_v57 }
 0x455   : > { %v1835_v29 = vpop.f32.mrf.mxu0  ;;  %v2990_v30 = vpop.f32.mrf.mxu1 }
 0x456   : > { %v1910_v42 = vadd.f32 %v1835_v29, %v1749_v39 }
 0x457   : > { %v1837_v31 = vpop.f32.mrf.mxu0 }
 0x458   : > { %v1911_v59 = vadd.f32 %v1837_v31, %v1750_v58 }
 0x459   : > { %v2389_v34 = vpop.f32.mrf.mxu1  ;;  %v1996_v35 = vpop.f32.mrf.mxu0 }
 0x45a   : > { %v2071_v45 = vadd.f32 %v1996_v35, %v1910_v42  ;;  %v2395_v47 = vadd.f32 %v2389_v34, %v2234_v44 }
 0x45b   : > { %v2995_v37 = vpop.f32.mrf.mxu1  ;;  %v1998_v38 = vpop.f32.mrf.mxu0 }
 0x45c   : > { %v2072_v60 = vadd.f32 %v1998_v38, %v1911_v59 }
 0x45d   : > { %v2157_v41 = vpop.f32.mrf.mxu0 }
 0x45e   : > { %v2232_v48 = vadd.f32 %v2157_v41, %v2071_v45 }
 0x45f   : > { %v2159_v43 = vpop.f32.mrf.mxu0 }
 0x460   : > { %v2233_v61 = vadd.f32 %v2159_v43, %v2072_v60 }
 0x461   : > { %v2318_v46 = vpop.f32.mrf.mxu0 }
 0x462   : > { %v2393_v51 = vadd.f32 %v2318_v46, %v2232_v48 }
 0x463   : > { %v2320_v49 = vpop.f32.mrf.mxu0  ;;  %v2550_v50 = vpop.f32.mrf.mxu1 }
 0x464   : > { %v2556_v52 = vadd.f32 %v2550_v50, %v2395_v47  ;;  %v2394_v63 = vadd.f32 %v2320_v49, %v2233_v61 }
 0x465   : > { %v2479_v53 = vpop.f32.mrf.mxu0  ;;  %v3000_v54 = vpop.f32.mrf.mxu1 }
 0x466   : > { %v2554_v56 = vadd.f32 %v2479_v53, %v2393_v51  ;;  %2605 = vrot.lane.b32.xlu0 %v2556_v52, %s3236_s19 }
 0x467   : > { %v2481_v62 = vpop.f32.mrf.mxu0 }
 0x468   : > { %2558 = vrot.lane.b32.xlu1 %v2554_v56, %s3228_s13  ;;  %v2555_v1 = vadd.f32 %v2481_v62, %v2394_v63  ;;  %s3243_s13 = smov 112  }
 0x46a   : > { %2561 = vrot.lane.b32.xlu0 %v2554_v56, %s3237_s20 }
 0x46c   : > { %2567 = vrot.lane.b32.xlu1 %v2554_v56, %s3238_s21 }
 0x46e   : > { %2564 = vrot.lane.b32.xlu0 %v2554_v56, %s3239_s22 }
 0x470   : > { %2570 = vrot.lane.b32.xlu1 %v2554_v56, %s3240_s15 }
 0x472   : > { %2577 = vrot.lane.b32.xlu0 %v2554_v56, %s3241_s23 }
 0x474   : > { %2573 = vrot.lane.b32.xlu1 %v2554_v56, %s3242_s29 }
 0x476   : > { %2584 = vrot.lane.b32.xlu0 %v2555_v1, %s3243_s13 }
 0x478   : > { %2587 = vrot.lane.b32.xlu1 %v2555_v1, %s3230_s14  ;;  %s297_s14 = sand.u32 1, %s3186_s25  }
 0x479   : > { %s2647_s29 = scalar_lea.sflag [#allocation5], %s297_s14 }
 0x47a   : > { %2596 = vrot.lane.b32.xlu0 %v2555_v1, %s3244_s8  ;;  %s3248_s8 = smov [#allocation6]  }
 0x47c   : > { %2590 = vrot.lane.b32.xlu1 %v2555_v1, %s3232_s17  ;;  %s2750_s17 = sshll.u32 %s297_s14, 3 }
 0x47d   : > { %s299_s20 = scalar_lea.vmem [#allocation6], %s2750_s17 }
 0x47e   : > { %2599 = vrot.lane.b32.xlu0 %v2555_v1, %s3245_s9  ;;  %s2661_s21 = sshll.u32 %s299_s20, 4  ;;  %s2662_s21 = int_to_ptr.vmem [resolvable:$true] %s2661_s21 }
 0x47f   : > { %s3130_s13 = scalar_lea.vmem %s2662_s21, 128 }
 0x480   : > { %2593 = vrot.lane.b32.xlu1 %v2555_v1, %s3246_s16  ;;  %p3131_p6 = scmp.ne.s32.totalorder %s2662_s21, %s3130_s13 }
 0x482   : > { %2610 = vrot.lane.b32.xlu0 %v2556_v52, %s3247_s18  ;;  %p3132_p9 = pnand %p3131_p6, %p3327_p5 }
 0x484   : > { %2603 = vrot.lane.b32.xlu1 %v2555_v1, %s3236_s19  ;;  %s2797_s19 = sshll.u32 %s3310_s28, 7  ;;  %p3133_p10 = pneg %p3132_p9 }
 0x485   : > { %s3134_s28 = sshll.u32 %s3248_s8, 4  ;;  %s3135_s28 = int_to_ptr.vmem [resolvable:$false] %s3134_s28 }
 0x486   : > { %s3136_s9 = scalar_lea.vmem %s3135_s28, 256  ;;  %p3137_p11 = scmp.lt.s32.totalorder %s2662_s21, %s3135_s28 }
 0x487   : > { %p3138_p12 = scmp.lt.s32.totalorder %s3136_s9, %s3130_s13 }
 0x488   : > { %2579 = vrot.lane.b32.xlu1 %v2555_v1, %s3241_s23  ;;  %s2659_s23 = scalar_lea.hbm %s3710_s7, %s2797_s19 }
 0x489   : > { %p3139_p13 = por %p3138_p12, %p3137_p11 }
 0x48b   : > { %p3140_p0 = pnand %p3139_p13, %p3133_p10 }
 0x4d8   : > { %v2606_v3 = vpop.permute.xlu0 %2605 }
 0x4da   : > { %v2559_v4 = vpop.permute.xlu1 %2558 }
 0x4db   : > { %v2614_v15 = vsel %vm2613_vm0, %v2554_v56, %v2559_v4 }
 0x4dc   : > { %v2562_v5 = vpop.permute.xlu0 %2561 }
 0x4dd   : > { %v2616_v18 = vsel %vm2615_vm1, %v2614_v15, %v2562_v5 }
 0x4de   : > { %v2568_v6 = vpop.permute.xlu1 %2567 }
 0x4e0   : > { %v2565_v7 = vpop.permute.xlu0 %2564 }
 0x4e1   : > { %v2618_v21 = vsel %vm2617_vm9, %v2616_v18, %v2565_v7 }
 0x4e2   : > { %v2571_v8 = vpop.permute.xlu1 %2570  ;;  %v2619_v24 = vsel %vm482_vm2, %v2618_v21, %v2568_v6 }
 0x4e3   : > { %v2621_v29 = vsel %vm2620_vm11, %v2619_v24, %v2571_v8 }
 0x4e4   : > { %v2578_v9 = vpop.permute.xlu0 %2577 }
 0x4e6   : > { %v2574_v10 = vpop.permute.xlu1 %2573 }
 0x4e7   : > { %v2623_v32 = vsel %vm2622_vm12, %v2621_v29, %v2574_v10 }
 0x4e8   : > { %v2585_v11 = vpop.permute.xlu0 %2584 }
 0x4ea   : > { %v2588_v12 = vpop.permute.xlu1 %2587 }
 0x4eb   : > { %v2626_v16 = vsel %vm2613_vm0, %v2585_v11, %v2588_v12 }
 0x4ec   : > { %v2597_v13 = vpop.permute.xlu0 %2596 }
 0x4ee   : > { %v2591_v14 = vpop.permute.xlu1 %2590 }
 0x4ef   : > { %v2627_v17 = vsel %vm2615_vm1, %v2626_v16, %v2591_v14 }
 0x4f0   : > { %v2600_v19 = vpop.permute.xlu0 %2599 }
 0x4f2   : > { %v2594_v0 = vpop.permute.xlu1 %2593 }
 0x4f3   : > { %v2628_v20 = vsel %vm2617_vm9, %v2627_v17, %v2594_v0 }
 0x4f4   : > { %v2629_v22 = vsel %vm482_vm2, %v2628_v20, %v2597_v13  ;;  %v2611_v28 = vpop.permute.xlu0 %2610 }
 0x4f5   : > { %v2630_v26 = vsel %vm2620_vm11, %v2629_v22, %v2600_v19 }
 0x4f6   : > { %v2604_v23 = vpop.permute.xlu1 %2603 }
 0x4f7   : > { %v2608_v25 = vsel %vm2607_vm10, %v2604_v23, %v2606_v3 }
 0x4f8   : > { %v2631_v27 = vsel %vm2622_vm12, %v2630_v26, %v2608_v25 }
 0x4f9   : > { %v2632_v30 = vsel %vm2624_vm13, %v2631_v27, %v2611_v28 }
 0x4fa   : > { %v2580_v31 = vpop.permute.xlu1 %2579  ;;  %v2640_v35 = vadd.f32 %v2637_v2, %v2632_v30 }
 0x4fb   : > { %v2582_v33 = vsel %vm2581_vm14, %v2578_v9, %v2580_v31 }
 0x4fc   : > { %v2625_v34 = vsel %vm2624_vm13, %v2623_v32, %v2582_v33 }
 0x4fd   : > { %v2639_v36 = vadd.f32 %v2637_v2, %v2625_v34 }
 0x4ff   : > { %v2643_v37 = vcombine.low %v2639_v36, %v2640_v35 }
 0x501   : > { %2645 = vst [vmem:[%s299_s20] sm:$0xff] %v2643_v37 }
 0x502   : > { %3143 = shalt.err (!%p3140_p0)
}
 0x503   : > { %s3144_s16 = scalar_lea.hbm %s2659_s23, 128  ;;  %s3148_s17 = scalar_lea.hbm %s3710_s7, 256 }
 0x504   : > { %p3145_p1 = scmp.ne.s32.totalorder %s2659_s23, %s3144_s16  ;;  %p3149_p4 = scmp.lt.s32.totalorder %s2659_s23, %s3710_s7 }
 0x505   : > { %p3150_p7 = scmp.lt.s32.totalorder %s3148_s17, %s3144_s16 }
 0x506   : > { %p3146_p2 = pnand %p3145_p1, %p3327_p5 }
 0x507   : > { %p3151_p8 = por %p3150_p7, %p3149_p4 }
 0x508   : > { %p3147_p3 = pneg %p3146_p2 }
 0x50a   : > { %p3152_p6 = pnand %p3151_p8, %p3147_p3 }
 0x50c   : > { %3155 = shalt.err (!%p3152_p6)
}
 0x50d   : > { %3005 = dma.vmem_to_hbm [thread:$0]  (%p3327_p5), %s2662_s21, 128, %s2659_s23, %s2647_s29  }
 0x50e PF: > { %p3017_p9 = scmp.ge.s32.totalorder %s3194_s27, 2  ;;  %s2673_s22 = sand.u32 1, %s3182_s24  }
 0x50f   : > { %p3714_p10 = scmp.ne.s32.totalorder %s3712_s12, 0  ;;  %s2674_s15 = scalar_lea.sflag [#allocation5], %s2673_s22 }
 0x511   : > { %p3012_p11 = pnand %p3017_p9, %p3714_p10 }
 0x513   : > { %p3013_p12 = pneg %p3012_p11 }
 0x515   : > { %3177 = dma.done.wait (%p3013_p12), %s2674_s15, 128  }
 0x516   : > { %3179 = vsyncadd (%p3013_p12), %s2674_s15, 4294967168  ;;  %p18_p13 = scmp.ge.s32.totalorder %s3314_s30, 4   ;;  %s3715_s24 = smov %s3186_s25 }
 0x517   : > { %s3716_s25 = smov %s3190_s26  ;;  %s3717_s26 = smov %s3325_s10 }
 0x518   : > { %s3718_s27 = smov %s3314_s30  ;;  %20 = sbr.rel (!%p18_p13) target bundleno = 4 (0x4), region = 103 }
 0x51d   :  { %2679 = vsyncpa [#allocation4], 1 }
 0x51e   :  { %2681 = vsyncpa [#allocation4 + $0x1], 1 }
 0x51f   :  { %2682 = vsyncpa [#allocation5], 1 }
 0x520   :  { %2684 = vsyncpa [#allocation5 + $0x1], 1 }

</bundles_post_ra>
